<compile_context>
chip_gen: v7x
topology: tpu7x:2x2x1
jax: 0.10.0
libtpu: 0.0.40
codegen_flags: <defaults>
</compile_context>

<pallas_src>
import functools

import jax
import jax.numpy as jnp
from jax import lax
from jax.experimental import pallas as pl
from jax.experimental.pallas import tpu as pltpu


# ----------------------------------------------------------------------------
# Recurrence kernel: one grid step == TB time steps, lane-major (nh, ns_block),
# fcT MLP fused per step (MXU is otherwise idle in this kernel).
# ----------------------------------------------------------------------------
def _recurrence_kernel(forc_ref, wg_ref, c1_ref, w1l_ref, w2t_ref, b2_ref,
                       y_ref, s0, sv, s2, s3, *, nh, tb, unroll):
    @pl.when(pl.program_id(1) == 0)
    def _():
        s0[...] = jnp.zeros_like(s0)
        sv[...] = jnp.zeros_like(sv)
        s2[...] = jnp.zeros_like(s2)
        s3[...] = jnp.zeros_like(s3)

    def step(t, carry):
        frow = forc_ref[t]                      # (5, ns_blk): [Ps, Ta, E, Pl, LAI]
        ps = frow[0:1, :]
        ta = frow[1:2, :]
        e = frow[2:3, :]
        plq = frow[3:4, :]
        lai = frow[4:5, :]

        # --- fused fcT: v = sigmoid(w2.T @ tanh(w1_lai*LAI + c1) + b2) ------
        h = jnp.tanh(w1l_ref[...] * lai + c1_ref[...])          # (256, ns_blk)
        z = jnp.dot(w2t_ref[...], h,
                    preferred_element_type=jnp.float32) + b2_ref[...]
        v = jax.nn.sigmoid(z)                                    # (3*nh, ns_blk)
        vi = v[0:nh, :]
        vk = v[nh:2 * nh, :]
        ve = v[2 * nh:3 * nh, :] * 5.0

        # --- time-invariant gates (cheap resident VMEM loads) ---------------
        gm = wg_ref[0]
        k1 = wg_ref[1]
        k2 = wg_ref[2]
        k23 = wg_ref[3]
        k3 = wg_ref[4]
        gl = wg_ref[5]
        ga = wg_ref[6]
        qb = wg_ref[7]
        ge = wg_ref[8]

        pl1 = plq * (1.0 - vi)
        pl2 = plq * vi
        ev = e * ve

        # --- bucket recurrence ------------------------------------------------
        h0 = s0[...] + ps
        qsm = jnp.minimum(h0, jnp.maximum(ta * gm, 0.0))
        hv = jnp.maximum(sv[...] + pl1 - ev, 0.0)
        qv = hv * vk
        h2 = jnp.maximum(s2[...] + qsm + qv - e * ge + pl2, 0.0)
        hh = jnp.maximum(h2 - gl, 0.0)
        # Guarded pow: never feed 0 to the exp(k1*log(x)) EUP path.
        q1 = jnp.where(hh > 0.0,
                       jnp.power(jnp.where(hh > 0.0, hh, 1.0), k1), 0.0)
        q2s = jnp.minimum(h2, gl) * k2
        q2 = q2s * (1.0 - k23)
        h3 = s3[...] + q2s * k23
        q3 = h3 * k3 + qb

        s0[...] = h0 - qsm
        sv[...] = hv - qv
        s2[...] = h2 - q1 - q2s
        s3[...] = h3 - q3

        # Lane-dense output row (1, ns_blk); block written back once per tb steps.
        y_ref[t] = jnp.sum((q1 + q2 + q3) * ga, axis=0, keepdims=True)
        return carry

    lax.fori_loop(0, tb, step, 0, unroll=unroll)


def _run_recurrence(forc, wg, c1t, w1_lai, w2t, b2, *, tb, ns_block, unroll):
    nt, nfe, ns = forc.shape
    assert nfe == 5
    nh = wg.shape[1]
    nhid = c1t.shape[0]

    # --- site (lane) axis padding & block choice -----------------------------
    ns_pad = pl.cdiv(ns, 128) * 128
    if ns_block is None:
        ns_block = 512
    ns_block = max(128, (min(ns_block, ns_pad) // 128) * 128)
    while ns_pad % ns_block != 0:         # always terminates at 128
        ns_block -= 128
    # v7x megacore: prefer >= 2 blocks on the parallel grid axis when possible.
    if ns_pad // ns_block < 2 and ns_pad >= 256 and (ns_pad // 128) % 2 == 0:
        ns_block = ns_pad // 2

    # --- time axis blocking ---------------------------------------------------
    tb = min(tb, nt)
    if tb < nt:
        tb = max(8, (tb // 8) * 8)
    nt_pad = pl.cdiv(nt, tb) * tb

    if ns_pad != ns:
        pad_ns = ns_pad - ns
        forc = jnp.pad(forc, ((0, 0), (0, 0), (0, pad_ns)))
        wg = jnp.pad(wg, ((0, 0), (0, 0), (0, pad_ns)))
        c1t = jnp.pad(c1t, ((0, 0), (0, pad_ns)))
    if nt_pad != nt:
        forc = jnp.pad(forc, ((0, nt_pad - nt), (0, 0), (0, 0)))

    grid = (ns_pad // ns_block, nt_pad // tb)

    # Explicit VMEM budget: double-buffered I/O blocks + resident operands +
    # headroom for the (nhid, ns_block) tanh intermediate; capped below v7x's
    # 64 MiB physical VMEM.
    f32 = 4
    blk = f32 * (tb * 8 * ns_block          # forc block (5 rows -> 8 sublanes)
                 + tb * 8 * ns_block        # y block   (1 row  -> 8 sublanes)
                 + 9 * nh * ns_block        # resident gates
                 + nhid * ns_block          # resident c1
                 + 3 * nh * nhid)           # fcT weights
    scratch = f32 * (4 * nh * ns_block + 2 * nhid * ns_block)
    vmem_limit = int(min(max(2 * blk + scratch + (8 << 20), 32 << 20), 48 << 20))

    y = pl.pallas_call(
        functools.partial(_recurrence_kernel, nh=nh, tb=tb, unroll=unroll),
        out_shape=jax.ShapeDtypeStruct((nt_pad, 1, ns_pad), jnp.float32),
        grid_spec=pltpu.PrefetchScalarGridSpec(
            num_scalar_prefetch=0,
            grid=grid,
            in_specs=[
                pl.BlockSpec((tb, 5, ns_block), lambda s, t: (t, 0, s)),
                pl.BlockSpec((9, nh, ns_block), lambda s, t: (0, 0, s)),
                pl.BlockSpec((nhid, ns_block), lambda s, t: (0, s)),
                pl.BlockSpec((nhid, 1), lambda s, t: (0, 0)),
                pl.BlockSpec((3 * nh, nhid), lambda s, t: (0, 0)),
                pl.BlockSpec((3 * nh, 1), lambda s, t: (0, 0)),
            ],
            out_specs=pl.BlockSpec((tb, 1, ns_block), lambda s, t: (t, 0, s)),
            scratch_shapes=[pltpu.VMEM((nh, ns_block), jnp.float32)
                            for _ in range(4)],
        ),
        compiler_params=pltpu.CompilerParams(
            # Sites are independent -> ns axis may split across TensorCores
            # (v7x megacore); time carries state -> sequential.
            dimension_semantics=("parallel", "arbitrary"),
            vmem_limit_bytes=vmem_limit),
    )(forc, wg, c1t, w1_lai, w2t, b2)
    return y[:nt, 0, :ns]


# ----------------------------------------------------------------------------
# Gate / forcing preparation (matches the PyTorch forward, dropout = eval mode)
# ----------------------------------------------------------------------------
def _prepare_inputs(x, xc, params):
    nt, ns, _ = x.shape
    P, E, T1, T2, LAI = [x[:, :, i] for i in range(5)]
    hp = jax.lax.Precision.HIGHEST
    nh = params["fc_w2"].shape[1] // 9

    # Rain/snow partition (constant 3.1415 kept to match the PyTorch module).
    Ta = (T1 + T2) * 0.5
    denom = T2 - T1
    safe = jnp.where(denom == 0.0, 1.0, denom)
    ratio = jnp.clip((T1 + T2) / safe, -1.0, 1.0)
    rP = 1.0 - jnp.arccos(ratio) / 3.1415
    rP = jnp.where(T1 >= 0.0, 1.0, rP)
    rP = jnp.where(T2 <= 0.0, 0.0, rP)
    Ps = P * (1.0 - rP)
    Pl = P * rP
    forc = jnp.stack([Ps, Ta, E, Pl, LAI], axis=1).astype(jnp.float32)  # (nt,5,ns)

    # Tiny fc MLP + time-invariant gate activations stay in XLA.
    w = jnp.dot(jnp.tanh(jnp.dot(xc, params["fc_w1"], precision=hp)
                         + params["fc_b1"]),
                params["fc_w2"], precision=hp) + params["fc_b2"]
    wr = w.reshape(ns, 9, nh)
    gm = jnp.exp(wr[:, 0]) + 1.0
    k1 = jax.nn.sigmoid(wr[:, 1])
    k2 = jax.nn.sigmoid(wr[:, 2])
    k23 = jax.nn.sigmoid(wr[:, 3])
    k3 = jax.nn.sigmoid(wr[:, 4]) / 10.0
    gl = jnp.exp(wr[:, 5]) * 2.0
    # TODO(synk): nn.Dropout on the ga gate treated as identity (eval mode).
    ga = jax.nn.softmax(wr[:, 6], axis=-1)
    qb = jax.nn.relu(wr[:, 7])
    ge = jax.nn.sigmoid(wr[:, 8]) * 5.0
    wg = jnp.stack([gm, k1, k2, k23, k3, gl, ga, qb, ge], axis=0)   # (9, ns, nh)
    wg = jnp.transpose(wg, (0, 2, 1)).astype(jnp.float32)           # (9, nh, ns)

    # fcT split: per-site static part precomputed (lane-major, resident in
    # VMEM); the LAI-dependent part is fused into the recurrence kernel.
    # (As in the PyTorch forward, only LAI is the time-varying input => nf=1.)
    c1 = jnp.dot(xc, params["fcT_w1"][1:], precision=hp) + params["fcT_b1"]
    c1t = jnp.transpose(c1).astype(jnp.float32)                      # (256, ns)
    w1_lai = params["fcT_w1"][0].reshape(-1, 1).astype(jnp.float32)  # (256, 1)
    w2t = jnp.transpose(params["fcT_w2"]).astype(jnp.float32)        # (3nh, 256)
    b2 = params["fcT_b2"].reshape(-1, 1).astype(jnp.float32)         # (3nh, 1)
    return forc, wg, c1t, w1_lai, w2t, b2


# ----------------------------------------------------------------------------
# Full forward (Pallas)
# ----------------------------------------------------------------------------
@functools.partial(jax.jit, static_argnames=("tb", "ns_block", "unroll"))
def waternet1104_forward(x, xc, params, tb=128, ns_block=None, unroll=1):
    forc, wg, c1t, w1_lai, w2t, b2 = _prepare_inputs(x, xc, params)
    return _run_recurrence(forc, wg, c1t, w1_lai, w2t, b2,
                           tb=tb, ns_block=ns_block, unroll=unroll)


# ----------------------------------------------------------------------------
# Pure-JAX references for verification
# ----------------------------------------------------------------------------
def _recurrence_scan(forc, wg, c1t, w1_lai, w2t, b2):
    """lax.scan over the SAME prepared tensors the Pallas recurrence consumes."""
    nh = wg.shape[1]
    hp = jax.lax.Precision.HIGHEST
    gm, k1, k2, k23, k3, gl, ga, qb, ge = [wg[i] for i in range(9)]

    def step(state, frow):
        s0, sv, s2, s3 = state
        ps, ta, e, plq, lai = [frow[i:i + 1, :] for i in range(5)]
        h = jnp.tanh(w1_lai * lai + c1t)
        z = jnp.dot(w2t, h, precision=hp) + b2
        v = jax.nn.sigmoid(z)
        vi, vk, ve = v[:nh], v[nh:2 * nh], v[2 * nh:3 * nh] * 5.0
        pl1 = plq * (1.0 - vi)
        pl2 = plq * vi
        ev = e * ve
        h0 = s0 + ps
        qsm = jnp.minimum(h0, jnp.maximum(ta * gm, 0.0))
        hv = jnp.maximum(sv + pl1 - ev, 0.0)
        qv = hv * vk
        h2 = jnp.maximum(s2 + qsm + qv - e * ge + pl2, 0.0)
        hh = jnp.maximum(h2 - gl, 0.0)
        q1 = jnp.where(hh > 0.0,
                       jnp.power(jnp.where(hh > 0.0, hh, 1.0), k1), 0.0)
        q2s = jnp.minimum(h2, gl) * k2
        q2 = q2s * (1.0 - k23)
        h3 = s3 + q2s * k23
        q3 = h3 * k3 + qb
        y = jnp.sum((q1 + q2 + q3) * ga, axis=0)
        return (h0 - qsm, hv - qv, h2 - q1 - q2s, h3 - q3), y

    init = tuple(jnp.zeros_like(gm) for _ in range(4))
    _, ys = lax.scan(step, init, forc)
    return ys


def waternet1104_reference(x, xc, params, nh):
    """Pure-JAX (no Pallas) re-implementation of the PyTorch forward."""
    nt, ns, _ = x.shape
    P, E, T1, T2, LAI = [x[:, :, i] for i in range(5)]
    hp = jax.lax.Precision.HIGHEST

    Ta = (T1 + T2) * 0.5
    denom = T2 - T1
    safe = jnp.where(denom == 0.0, 1.0, denom)
    ratio = jnp.clip((T1 + T2) / safe, -1.0, 1.0)
    rP = 1.0 - jnp.arccos(ratio) / 3.1415
    rP = jnp.where(T1 >= 0.0, 1.0, rP)
    rP = jnp.where(T2 <= 0.0, 0.0, rP)
    Ps, Pl = P * (1.0 - rP), P * rP

    w = jnp.dot(jnp.tanh(jnp.dot(xc, params["fc_w1"], precision=hp)
                         + params["fc_b1"]),
                params["fc_w2"], precision=hp) + params["fc_b2"]
    xcT = jnp.concatenate([LAI[:, :, None], jnp.tile(xc[None], (nt, 1, 1))],
                          axis=-1)
    v = jnp.dot(jnp.tanh(jnp.dot(xcT, params["fcT_w1"], precision=hp)
                         + params["fcT_b1"]),
                params["fcT_w2"], precision=hp) + params["fcT_b2"]

    gm = jnp.exp(w[:, :nh]) + 1.0
    k1 = jax.nn.sigmoid(w[:, nh:2 * nh])
    k2 = jax.nn.sigmoid(w[:, 2 * nh:3 * nh])
    k23 = jax.nn.sigmoid(w[:, 3 * nh:4 * nh])
    k3 = jax.nn.sigmoid(w[:, 4 * nh:5 * nh]) / 10.0
    gl = jnp.exp(w[:, 5 * nh:6 * nh]) * 2.0
    ga = jax.nn.softmax(w[:, 6 * nh:7 * nh], axis=1)
    qb = jax.nn.relu(w[:, 7 * nh:8 * nh])
    ge = jax.nn.sigmoid(w[:, 8 * nh:9 * nh]) * 5.0
    vi = jax.nn.sigmoid(v[:, :, :nh])
    vk = jax.nn.sigmoid(v[:, :, nh:2 * nh])
    ve = jax.nn.sigmoid(v[:, :, 2 * nh:3 * nh]) * 5.0
    Pl1 = Pl[:, :, None] * (1.0 - vi)
    Pl2 = Pl[:, :, None] * vi
    Ev = E[:, :, None] * ve

    def step(state, inp):
        s0, sv, s2, s3 = state
        ps, ta, e, pl1, pl2, ev, vkk = inp
        h0 = s0 + ps[:, None]
        qsm = jnp.minimum(h0, jnp.maximum(ta[:, None] * gm, 0.0))
        hv = jnp.maximum(sv + pl1 - ev, 0.0)
        qv = hv * vkk
        h2 = jnp.maximum(s2 + qsm + qv - e[:, None] * ge + pl2, 0.0)
        q1 = jnp.power(jnp.maximum(h2 - gl, 0.0), k1)
        q2s = jnp.minimum(h2, gl) * k2
        q2 = q2s * (1.0 - k23)
        h3 = s3 + q2s * k23
        q3 = h3 * k3 + qb
        y = jnp.sum((q1 + q2 + q3) * ga, axis=1)
        return (h0 - qsm, hv - qv, h2 - q1 - q2s, h3 - q3), y

    init = tuple(jnp.zeros((ns, nh), jnp.float32) for _ in range(4))
    _, ys = lax.scan(step, init, (Ps, Ta, E, Pl1, Pl2, Ev, vk))
    return ys


# ----------------------------------------------------------------------------
# main
# ----------------------------------------------------------------------------
if __name__ == "__main__":
    nh, nf, ng = 16, 1, 4     # nf must be 1: forward only feeds LAI into fcT
    nt, ns = 64, 8

    key = jax.random.PRNGKey(0)
    ks = jax.random.split(key, 16)

    params = {
        "fc_w1": 0.1 * jax.random.normal(ks[0], (ng, 256), jnp.float32),
        "fc_b1": 0.1 * jax.random.normal(ks[1], (256,), jnp.float32),
        "fc_w2": 0.1 * jax.random.normal(ks[2], (256, nh * 9), jnp.float32),
        "fc_b2": 0.1 * jax.random.normal(ks[3], (nh * 9,), jnp.float32),
        "fcT_w1": 0.1 * jax.random.normal(ks[4], (nf + ng, 256), jnp.float32),
        "fcT_b1": 0.1 * jax.random.normal(ks[5], (256,), jnp.float32),
        "fcT_w2": 0.1 * jax.random.normal(ks[6], (256, nh * 3), jnp.float32),
        "fcT_b2": 0.1 * jax.random.normal(ks[7], (nh * 3,), jnp.float32),
    }

    # Forcing data: P (precip), E (PET), T1 <= T2 (temps), LAI.
    P = 10.0 * jax.random.uniform(ks[8], (nt, ns), jnp.float32)
    E = 5.0 * jax.random.uniform(ks[9], (nt, ns), jnp.float32)
    T1 = 5.0 * jax.random.normal(ks[10], (nt, ns), jnp.float32) - 2.0
    T2 = T1 + 1.0 + 9.0 * jax.random.uniform(ks[11], (nt, ns), jnp.float32)
    LAI = 3.0 * jax.random.uniform(ks[12], (nt, ns), jnp.float32)
    x = jnp.stack([P, E, T1, T2, LAI], axis=-1)            # (nt, ns, 5)
    xc = jax.random.normal(ks[13], (ns, ng), jnp.float32)  # (ns, ng)

    # 1) Pallas forward.
    yout = jax.block_until_ready(waternet1104_forward(x, xc, params))
    assert yout.shape == (nt, ns)
    assert bool(jnp.all(jnp.isfinite(yout)))

    # 2) Check: Pallas recurrence (fused fcT on MXU) vs lax.scan on the same
    #    prepared tensors (XLA HIGHEST matmul) — tolerance absorbs MXU-vs-XLA.
    prep = jax.jit(_prepare_inputs)(x, xc, params)
    y_scan = jax.block_until_ready(jax.jit(_recurrence_scan)(*prep))
    assert bool(jnp.allclose(yout, y_scan, rtol=1e-2, atol=1e-2)), float(
        jnp.max(jnp.abs(yout - y_scan)))

    # 3) End-to-end check vs a pure-JAX reference of the PyTorch forward.
    yref = jax.block_until_ready(
        jax.jit(functools.partial(waternet1104_reference, nh=nh))(x, xc, params))
    assert bool(jnp.allclose(yout, yref, rtol=2e-2, atol=2e-2)), float(
        jnp.max(jnp.abs(yout - yref)))

    # 4) Different tiling (exercises time-block state carry, ns/time padding,
    #    unroll) — must match the default tiling almost exactly.
    y_tiled = jax.block_until_ready(
        waternet1104_forward(x, xc, params, tb=16, ns_block=128, unroll=2))
    assert bool(jnp.allclose(y_tiled, yout, rtol=1e-5, atol=1e-5)), float(
        jnp.max(jnp.abs(y_tiled - yout)))

    print("KERNEL_OK")
</pallas_src>

<mosaic_0001>
module attributes {stable_mosaic.version = 11 : i64} {
  func.func @_recurrence_kernel(%arg0: i32, %arg1: i32, %arg2: memref<64x5x128xf32, #tpu.memory_space<vmem>>, %arg3: memref<9x16x128xf32, #tpu.memory_space<vmem>>, %arg4: memref<256x128xf32, #tpu.memory_space<vmem>>, %arg5: memref<256x1xf32, #tpu.memory_space<vmem>>, %arg6: memref<48x256xf32, #tpu.memory_space<vmem>>, %arg7: memref<48x1xf32, #tpu.memory_space<vmem>>, %arg8: memref<64x1x128xf32, #tpu.memory_space<vmem>>, %arg9: memref<16x128xf32, #tpu.memory_space<vmem>>, %arg10: memref<16x128xf32, #tpu.memory_space<vmem>>, %arg11: memref<16x128xf32, #tpu.memory_space<vmem>>, %arg12: memref<16x128xf32, #tpu.memory_space<vmem>>) attributes {dimension_semantics = [#tpu.dimension_semantics<parallel>, #tpu.dimension_semantics<arbitrary>], iteration_bounds = array<i64: 1, 1>, scalar_prefetch = 0 : i64, scratch_operands = 4 : i64, tpu.core_type = #tpu.core_type<tc>, window_params = [{transform_indices = @transform_0, window_bounds = array<i64: 64, 5, 128>}, {transform_indices = @transform_1, window_bounds = array<i64: 9, 16, 128>}, {transform_indices = @transform_2, window_bounds = array<i64: 256, 128>}, {pipeline_mode = #tpu.pipeline_mode<synchronous>, transform_indices = @transform_3, window_bounds = array<i64: 256, 1>}, {pipeline_mode = #tpu.pipeline_mode<synchronous>, transform_indices = @transform_4, window_bounds = array<i64: 48, 256>}, {pipeline_mode = #tpu.pipeline_mode<synchronous>, transform_indices = @transform_5, window_bounds = array<i64: 48, 1>}, {transform_indices = @transform_6, window_bounds = array<i64: 64, 1, 128>}]} {
    %c0_i32 = arith.constant 0 : i32
    %0 = arith.cmpi eq, %arg1, %c0_i32 : i32
    %1 = arith.extui %0 : i1 to i32
    %c0_i32_0 = arith.constant 0 : i32
    %2 = arith.cmpi ne, %1, %c0_i32_0 : i32
    scf.if %2 {
      %cst = arith.constant 0.000000e+00 : f32
      %4 = vector.broadcast %cst : f32 to vector<16x128xf32>
      %c0 = arith.constant 0 : index
      %c0_3 = arith.constant 0 : index
      %5 = vector.load %arg9[%c0, %c0_3] : memref<16x128xf32, #tpu.memory_space<vmem>>, vector<16x128xf32>
      tpu.vector_store %arg9[%c0, %c0_3], %4 {strides = array<i32>} : memref<16x128xf32, #tpu.memory_space<vmem>>, vector<16x128xf32>,
      %cst_4 = arith.constant 0.000000e+00 : f32
      %6 = vector.broadcast %cst_4 : f32 to vector<16x128xf32>
      %c0_5 = arith.constant 0 : index
      %c0_6 = arith.constant 0 : index
      %7 = vector.load %arg10[%c0_5, %c0_6] : memref<16x128xf32, #tpu.memory_space<vmem>>, vector<16x128xf32>
      tpu.vector_store %arg10[%c0_5, %c0_6], %6 {strides = array<i32>} : memref<16x128xf32, #tpu.memory_space<vmem>>, vector<16x128xf32>,
      %cst_7 = arith.constant 0.000000e+00 : f32
      %8 = vector.broadcast %cst_7 : f32 to vector<16x128xf32>
      %c0_8 = arith.constant 0 : index
      %c0_9 = arith.constant 0 : index
      %9 = vector.load %arg11[%c0_8, %c0_9] : memref<16x128xf32, #tpu.memory_space<vmem>>, vector<16x128xf32>
      tpu.vector_store %arg11[%c0_8, %c0_9], %8 {strides = array<i32>} : memref<16x128xf32, #tpu.memory_space<vmem>>, vector<16x128xf32>,
      %cst_10 = arith.constant 0.000000e+00 : f32
      %10 = vector.broadcast %cst_10 : f32 to vector<16x128xf32>
      %c0_11 = arith.constant 0 : index
      %c0_12 = arith.constant 0 : index
      %11 = vector.load %arg12[%c0_11, %c0_12] : memref<16x128xf32, #tpu.memory_space<vmem>>, vector<16x128xf32>
      tpu.vector_store %arg12[%c0_11, %c0_12], %10 {strides = array<i32>} : memref<16x128xf32, #tpu.memory_space<vmem>>, vector<16x128xf32>,
    } else {
    }
    %c0_i32_1 = arith.constant 0 : i32
    %c64_i32 = arith.constant 64 : i32
    %3 = arith.addi %c0_i32_1, %c64_i32 : i32
    %c1_i32 = arith.constant 1 : i32
    scf.for %arg13 = %c0_i32_1 to %3 step %c1_i32  : i32 {
      %4 = arith.index_cast %arg13 : i32 to index
      %c0 = arith.constant 0 : index
      %c0_3 = arith.constant 0 : index
      %5 = vector.load %arg2[%4, %c0, %c0_3] : memref<64x5x128xf32, #tpu.memory_space<vmem>>, vector<1x5x128xf32>
      %6 = vector.shape_cast %5 : vector<1x5x128xf32> to vector<5x128xf32>
      %7 = vector.extract_strided_slice %6 {offsets = [0, 0], sizes = [1, 128], strides = [1, 1]} : vector<5x128xf32> to vector<1x128xf32>
      %8 = vector.extract_strided_slice %6 {offsets = [1, 0], sizes = [1, 128], strides = [1, 1]} : vector<5x128xf32> to vector<1x128xf32>
      %9 = vector.extract_strided_slice %6 {offsets = [2, 0], sizes = [1, 128], strides = [1, 1]} : vector<5x128xf32> to vector<1x128xf32>
      %10 = vector.extract_strided_slice %6 {offsets = [3, 0], sizes = [1, 128], strides = [1, 1]} : vector<5x128xf32> to vector<1x128xf32>
      %11 = vector.extract_strided_slice %6 {offsets = [4, 0], sizes = [1, 128], strides = [1, 1]} : vector<5x128xf32> to vector<1x128xf32>
      %c0_4 = arith.constant 0 : index
      %c0_5 = arith.constant 0 : index
      %12 = vector.load %arg5[%c0_4, %c0_5] : memref<256x1xf32, #tpu.memory_space<vmem>>, vector<256x1xf32>
      %13 = vector.broadcast %12 : vector<256x1xf32> to vector<256x128xf32>
      %14 = vector.broadcast %11 : vector<1x128xf32> to vector<256x128xf32>
      %15 = arith.mulf %13, %14 : vector<256x128xf32>
      %c0_6 = arith.constant 0 : index
      %c0_7 = arith.constant 0 : index
      %16 = vector.load %arg4[%c0_6, %c0_7] : memref<256x128xf32, #tpu.memory_space<vmem>>, vector<256x128xf32>
      %17 = arith.addf %15, %16 : vector<256x128xf32>
      %18 = math.tanh %17 : vector<256x128xf32>
      %c0_8 = arith.constant 0 : index
      %c0_9 = arith.constant 0 : index
      %19 = vector.load %arg6[%c0_8, %c0_9] : memref<48x256xf32, #tpu.memory_space<vmem>>, vector<48x256xf32>
      %cst = arith.constant dense<0.000000e+00> : vector<48x128xf32>
      %20 = tpu.matmul %19, %18, %cst {dimension_numbers = #tpu.dot_dimension_numbers<[1], [0], [0], [1], [0, 0, 1, 1], [], []>} : vector<48x256xf32>, vector<256x128xf32>, vector<48x128xf32> -> vector<48x128xf32>
      %c0_10 = arith.constant 0 : index
      %c0_11 = arith.constant 0 : index
      %21 = vector.load %arg7[%c0_10, %c0_11] : memref<48x1xf32, #tpu.memory_space<vmem>>, vector<48x1xf32>
      %22 = vector.broadcast %21 : vector<48x1xf32> to vector<48x128xf32>
      %23 = arith.addf %20, %22 : vector<48x128xf32>
      %24 = arith.negf %23 : vector<48x128xf32>
      %25 = math.exp %24 : vector<48x128xf32>
      %cst_12 = arith.constant 1.000000e+00 : f32
      %26 = vector.broadcast %cst_12 : f32 to vector<48x128xf32>
      %27 = arith.addf %26, %25 : vector<48x128xf32>
      %28 = arith.divf %26, %27 : vector<48x128xf32>
      %29 = vector.extract_strided_slice %28 {offsets = [0, 0], sizes = [16, 128], strides = [1, 1]} : vector<48x128xf32> to vector<16x128xf32>
      %30 = vector.extract_strided_slice %28 {offsets = [16, 0], sizes = [16, 128], strides = [1, 1]} : vector<48x128xf32> to vector<16x128xf32>
      %31 = vector.extract_strided_slice %28 {offsets = [32, 0], sizes = [16, 128], strides = [1, 1]} : vector<48x128xf32> to vector<16x128xf32>
      %cst_13 = arith.constant 5.000000e+00 : f32
      %32 = vector.broadcast %cst_13 : f32 to vector<16x128xf32>
      %33 = arith.mulf %31, %32 : vector<16x128xf32>
      %c0_14 = arith.constant 0 : index
      %c0_15 = arith.constant 0 : index
      %c0_16 = arith.constant 0 : index
      %34 = vector.load %arg3[%c0_14, %c0_15, %c0_16] : memref<9x16x128xf32, #tpu.memory_space<vmem>>, vector<1x16x128xf32>
      %35 = vector.shape_cast %34 : vector<1x16x128xf32> to vector<16x128xf32>
      %c1 = arith.constant 1 : index
      %c0_17 = arith.constant 0 : index
      %c0_18 = arith.constant 0 : index
      %36 = vector.load %arg3[%c1, %c0_17, %c0_18] : memref<9x16x128xf32, #tpu.memory_space<vmem>>, vector<1x16x128xf32>
      %37 = vector.shape_cast %36 : vector<1x16x128xf32> to vector<16x128xf32>
      %c2 = arith.constant 2 : index
      %c0_19 = arith.constant 0 : index
      %c0_20 = arith.constant 0 : index
      %38 = vector.load %arg3[%c2, %c0_19, %c0_20] : memref<9x16x128xf32, #tpu.memory_space<vmem>>, vector<1x16x128xf32>
      %39 = vector.shape_cast %38 : vector<1x16x128xf32> to vector<16x128xf32>
      %c3 = arith.constant 3 : index
      %c0_21 = arith.constant 0 : index
      %c0_22 = arith.constant 0 : index
      %40 = vector.load %arg3[%c3, %c0_21, %c0_22] : memref<9x16x128xf32, #tpu.memory_space<vmem>>, vector<1x16x128xf32>
      %41 = vector.shape_cast %40 : vector<1x16x128xf32> to vector<16x128xf32>
      %c4 = arith.constant 4 : index
      %c0_23 = arith.constant 0 : index
      %c0_24 = arith.constant 0 : index
      %42 = vector.load %arg3[%c4, %c0_23, %c0_24] : memref<9x16x128xf32, #tpu.memory_space<vmem>>, vector<1x16x128xf32>
      %43 = vector.shape_cast %42 : vector<1x16x128xf32> to vector<16x128xf32>
      %c5 = arith.constant 5 : index
      %c0_25 = arith.constant 0 : index
      %c0_26 = arith.constant 0 : index
      %44 = vector.load %arg3[%c5, %c0_25, %c0_26] : memref<9x16x128xf32, #tpu.memory_space<vmem>>, vector<1x16x128xf32>
      %45 = vector.shape_cast %44 : vector<1x16x128xf32> to vector<16x128xf32>
      %c6 = arith.constant 6 : index
      %c0_27 = arith.constant 0 : index
      %c0_28 = arith.constant 0 : index
      %46 = vector.load %arg3[%c6, %c0_27, %c0_28] : memref<9x16x128xf32, #tpu.memory_space<vmem>>, vector<1x16x128xf32>
      %47 = vector.shape_cast %46 : vector<1x16x128xf32> to vector<16x128xf32>
      %c7 = arith.constant 7 : index
      %c0_29 = arith.constant 0 : index
      %c0_30 = arith.constant 0 : index
      %48 = vector.load %arg3[%c7, %c0_29, %c0_30] : memref<9x16x128xf32, #tpu.memory_space<vmem>>, vector<1x16x128xf32>
      %49 = vector.shape_cast %48 : vector<1x16x128xf32> to vector<16x128xf32>
      %c8 = arith.constant 8 : index
      %c0_31 = arith.constant 0 : index
      %c0_32 = arith.constant 0 : index
      %50 = vector.load %arg3[%c8, %c0_31, %c0_32] : memref<9x16x128xf32, #tpu.memory_space<vmem>>, vector<1x16x128xf32>
      %51 = vector.shape_cast %50 : vector<1x16x128xf32> to vector<16x128xf32>
      %cst_33 = arith.constant 1.000000e+00 : f32
      %52 = vector.broadcast %cst_33 : f32 to vector<16x128xf32>
      %53 = arith.subf %52, %29 : vector<16x128xf32>
      %54 = vector.broadcast %10 : vector<1x128xf32> to vector<16x128xf32>
      %55 = arith.mulf %54, %53 : vector<16x128xf32>
      %56 = vector.broadcast %10 : vector<1x128xf32> to vector<16x128xf32>
      %57 = arith.mulf %56, %29 : vector<16x128xf32>
      %58 = vector.broadcast %9 : vector<1x128xf32> to vector<16x128xf32>
      %59 = arith.mulf %58, %33 : vector<16x128xf32>
      %c0_34 = arith.constant 0 : index
      %c0_35 = arith.constant 0 : index
      %60 = vector.load %arg9[%c0_34, %c0_35] : memref<16x128xf32, #tpu.memory_space<vmem>>, vector<16x128xf32>
      %61 = vector.broadcast %7 : vector<1x128xf32> to vector<16x128xf32>
      %62 = arith.addf %60, %61 : vector<16x128xf32>
      %63 = vector.broadcast %8 : vector<1x128xf32> to vector<16x128xf32>
      %64 = arith.mulf %63, %35 : vector<16x128xf32>
      %cst_36 = arith.constant 0.000000e+00 : f32
      %65 = vector.broadcast %cst_36 : f32 to vector<16x128xf32>
      %66 = arith.maximumf %64, %65 : vector<16x128xf32>
      %67 = arith.minimumf %62, %66 : vector<16x128xf32>
      %c0_37 = arith.constant 0 : index
      %c0_38 = arith.constant 0 : index
      %68 = vector.load %arg10[%c0_37, %c0_38] : memref<16x128xf32, #tpu.memory_space<vmem>>, vector<16x128xf32>
      %69 = arith.addf %68, %55 : vector<16x128xf32>
      %70 = arith.subf %69, %59 : vector<16x128xf32>
      %cst_39 = arith.constant 0.000000e+00 : f32
      %71 = vector.broadcast %cst_39 : f32 to vector<16x128xf32>
      %72 = arith.maximumf %70, %71 : vector<16x128xf32>
      %73 = arith.mulf %72, %30 : vector<16x128xf32>
      %c0_40 = arith.constant 0 : index
      %c0_41 = arith.constant 0 : index
      %74 = vector.load %arg11[%c0_40, %c0_41] : memref<16x128xf32, #tpu.memory_space<vmem>>, vector<16x128xf32>
      %75 = arith.addf %74, %67 : vector<16x128xf32>
      %76 = arith.addf %75, %73 : vector<16x128xf32>
      %77 = vector.broadcast %9 : vector<1x128xf32> to vector<16x128xf32>
      %78 = arith.mulf %77, %51 : vector<16x128xf32>
      %79 = arith.subf %76, %78 : vector<16x128xf32>
      %80 = arith.addf %79, %57 : vector<16x128xf32>
      %cst_42 = arith.constant 0.000000e+00 : f32
      %81 = vector.broadcast %cst_42 : f32 to vector<16x128xf32>
      %82 = arith.maximumf %80, %81 : vector<16x128xf32>
      %83 = arith.subf %82, %45 : vector<16x128xf32>
      %cst_43 = arith.constant 0.000000e+00 : f32
      %84 = vector.broadcast %cst_43 : f32 to vector<16x128xf32>
      %85 = arith.maximumf %83, %84 : vector<16x128xf32>
      %cst_44 = arith.constant 0.000000e+00 : f32
      %86 = vector.broadcast %cst_44 : f32 to vector<16x128xf32>
      %87 = arith.cmpf ogt, %85, %86 : vector<16x128xf32>
      %cst_45 = arith.constant 0.000000e+00 : f32
      %88 = vector.broadcast %cst_45 : f32 to vector<16x128xf32>
      %89 = arith.cmpf ogt, %85, %88 : vector<16x128xf32>
      %cst_46 = arith.constant 1.000000e+00 : f32
      %90 = vector.broadcast %cst_46 : f32 to vector<16x128xf32>
      %91 = arith.select %89, %85, %90 : vector<16x128xi1>, vector<16x128xf32>
      %92 = math.powf %91, %37 : vector<16x128xf32>
      %cst_47 = arith.constant 0.000000e+00 : f32
      %93 = vector.broadcast %cst_47 : f32 to vector<16x128xf32>
      %94 = arith.select %87, %92, %93 : vector<16x128xi1>, vector<16x128xf32>
      %95 = arith.minimumf %82, %45 : vector<16x128xf32>
      %96 = arith.mulf %95, %39 : vector<16x128xf32>
      %cst_48 = arith.constant 1.000000e+00 : f32
      %97 = vector.broadcast %cst_48 : f32 to vector<16x128xf32>
      %98 = arith.subf %97, %41 : vector<16x128xf32>
      %99 = arith.mulf %96, %98 : vector<16x128xf32>
      %c0_49 = arith.constant 0 : index
      %c0_50 = arith.constant 0 : index
      %100 = vector.load %arg12[%c0_49, %c0_50] : memref<16x128xf32, #tpu.memory_space<vmem>>, vector<16x128xf32>
      %101 = arith.mulf %96, %41 : vector<16x128xf32>
      %102 = arith.addf %100, %101 : vector<16x128xf32>
      %103 = arith.mulf %102, %43 : vector<16x128xf32>
      %104 = arith.addf %103, %49 : vector<16x128xf32>
      %105 = arith.subf %62, %67 : vector<16x128xf32>
      %c0_51 = arith.constant 0 : index
      %c0_52 = arith.constant 0 : index
      %106 = vector.load %arg9[%c0_51, %c0_52] : memref<16x128xf32, #tpu.memory_space<vmem>>, vector<16x128xf32>
      tpu.vector_store %arg9[%c0_51, %c0_52], %105 {strides = array<i32>} : memref<16x128xf32, #tpu.memory_space<vmem>>, vector<16x128xf32>,
      %107 = arith.subf %72, %73 : vector<16x128xf32>
      %c0_53 = arith.constant 0 : index
      %c0_54 = arith.constant 0 : index
      %108 = vector.load %arg10[%c0_53, %c0_54] : memref<16x128xf32, #tpu.memory_space<vmem>>, vector<16x128xf32>
      tpu.vector_store %arg10[%c0_53, %c0_54], %107 {strides = array<i32>} : memref<16x128xf32, #tpu.memory_space<vmem>>, vector<16x128xf32>,
      %109 = arith.subf %82, %94 : vector<16x128xf32>
      %110 = arith.subf %109, %96 : vector<16x128xf32>
      %c0_55 = arith.constant 0 : index
      %c0_56 = arith.constant 0 : index
      %111 = vector.load %arg11[%c0_55, %c0_56] : memref<16x128xf32, #tpu.memory_space<vmem>>, vector<16x128xf32>
      tpu.vector_store %arg11[%c0_55, %c0_56], %110 {strides = array<i32>} : memref<16x128xf32, #tpu.memory_space<vmem>>, vector<16x128xf32>,
      %112 = arith.subf %102, %104 : vector<16x128xf32>
      %c0_57 = arith.constant 0 : index
      %c0_58 = arith.constant 0 : index
      %113 = vector.load %arg12[%c0_57, %c0_58] : memref<16x128xf32, #tpu.memory_space<vmem>>, vector<16x128xf32>
      tpu.vector_store %arg12[%c0_57, %c0_58], %112 {strides = array<i32>} : memref<16x128xf32, #tpu.memory_space<vmem>>, vector<16x128xf32>,
      %114 = arith.addf %94, %99 : vector<16x128xf32>
      %115 = arith.addf %114, %104 : vector<16x128xf32>
      %116 = arith.mulf %115, %47 : vector<16x128xf32>
      %cst_59 = arith.constant dense<0.000000e+00> : vector<128xf32>
      %117 = vector.multi_reduction <add>, %116, %cst_59 [0] : vector<16x128xf32> to vector<128xf32>
      %118 = vector.shape_cast %117 : vector<128xf32> to vector<1x128xf32>
      %119 = arith.index_cast %arg13 : i32 to index
      %c0_60 = arith.constant 0 : index
      %c0_61 = arith.constant 0 : index
      %120 = vector.load %arg8[%119, %c0_60, %c0_61] : memref<64x1x128xf32, #tpu.memory_space<vmem>>, vector<1x1x128xf32>
      %121 = vector.shape_cast %120 : vector<1x1x128xf32> to vector<1x128xf32>
      %122 = vector.shape_cast %118 : vector<1x128xf32> to vector<1x1x128xf32>
      tpu.vector_store %arg8[%119, %c0_60, %c0_61], %122 {strides = array<i32>} : memref<64x1x128xf32, #tpu.memory_space<vmem>>, vector<1x1x128xf32>,
    }
    %c64_i32_2 = arith.constant 64 : i32
    return
  }
  func.func @transform_0(%arg0: i32, %arg1: i32) -> (i32, i32, i32) {
    %c0_i32 = arith.constant 0 : i32
    %c0_i32_0 = arith.constant 0 : i32
    return %arg1, %c0_i32, %arg0 : i32, i32, i32
  }
  func.func @transform_1(%arg0: i32, %arg1: i32) -> (i32, i32, i32) {
    %c0_i32 = arith.constant 0 : i32
    %c0_i32_0 = arith.constant 0 : i32
    %c0_i32_1 = arith.constant 0 : i32
    return %c0_i32, %c0_i32_0, %arg0 : i32, i32, i32
  }
  func.func @transform_2(%arg0: i32, %arg1: i32) -> (i32, i32) {
    %c0_i32 = arith.constant 0 : i32
    %c0_i32_0 = arith.constant 0 : i32
    return %c0_i32, %arg0 : i32, i32
  }
  func.func @transform_3(%arg0: i32, %arg1: i32) -> (i32, i32) {
    %c0_i32 = arith.constant 0 : i32
    %c0_i32_0 = arith.constant 0 : i32
    %c0_i32_1 = arith.constant 0 : i32
    return %c0_i32, %c0_i32_0 : i32, i32
  }
  func.func @transform_4(%arg0: i32, %arg1: i32) -> (i32, i32) {
    %c0_i32 = arith.constant 0 : i32
    %c0_i32_0 = arith.constant 0 : i32
    %c0_i32_1 = arith.constant 0 : i32
    return %c0_i32, %c0_i32_0 : i32, i32
  }
  func.func @transform_5(%arg0: i32, %arg1: i32) -> (i32, i32) {
    %c0_i32 = arith.constant 0 : i32
    %c0_i32_0 = arith.constant 0 : i32
    %c0_i32_1 = arith.constant 0 : i32
    return %c0_i32, %c0_i32_0 : i32, i32
  }
  func.func @transform_6(%arg0: i32, %arg1: i32) -> (i32, i32, i32) {
    %c0_i32 = arith.constant 0 : i32
    %c0_i32_0 = arith.constant 0 : i32
    return %arg1, %c0_i32, %arg0 : i32, i32, i32
  }
}

</mosaic_0001>

<bundles_post_ra>
// kernel: waternet1104_forward.1
= control target key start
LH: loop header
LB: loop body
LE: loop exit
PB: predicated region body
PF: predicated region fallthrough
CT: control target
= control target key end

     0   :  { %v1050_v0 = vmov 0.0   ;;  %s1088_s21 = smov 0   ;;  %s1690_s0 = inlined_call_operand.vmem [shape: f32[64,5,128], index: 0, kind: input, shape index: {}]   ;;  %s1691_s1 = inlined_call_operand.vmem [shape: f32[9,16,128], index: 1, kind: input, shape index: {}]   ;;  %s1692_s2 = inlined_call_operand.vmem [shape: f32[256,128], index: 2, kind: input, shape index: {}]   ;;  %s1693_s3 = inlined_call_operand.vmem [shape: f32[256,1], index: 3, kind: input, shape index: {}]   ;;  %s1694_s4 = inlined_call_operand.vmem [shape: f32[48,256], index: 4, kind: input, shape index: {}]   ;;  %s1695_s5 = inlined_call_operand.vmem [shape: f32[48,1], index: 5, kind: input, shape index: {}]   ;;  %s1696_s6 = inlined_call_operand.vmem [shape: f32[64,1,128], index: 6, kind: output, shape index: {}]  }
   0x1   :  { %27 = vst [vmem:[#allocation2] sm:$0xff] %v1050_v0  ;;  %28 = vst [vmem:[#allocation2 + $0x8] sm:$0xff] %v1050_v0 }
   0x2   :  { %29 = vst [vmem:[#allocation3] sm:$0xff] %v1050_v0  ;;  %30 = vst [vmem:[#allocation3 + $0x8] sm:$0xff] %v1050_v0 }
   0x3   :  { %31 = vst [vmem:[#allocation4] sm:$0xff] %v1050_v0  ;;  %32 = vst [vmem:[#allocation4 + $0x8] sm:$0xff] %v1050_v0 }
   0x4   :  { %33 = vst [vmem:[#allocation5] sm:$0xff] %v1050_v0  ;;  %34 = vst [vmem:[#allocation5 + $0x8] sm:$0xff] %v1050_v0 }
   0x5 LB: > { %v60_v1 = vld [vmem:[%s1693_s3 + $0x80] sm:$0xff]  ;;  %v1051_v2 = vmov 0   ;;  %v61_v4 = vld [vmem:[%s1693_s3 + $0x88] sm:$0xff]  ;;  %v62_v6 = vld [vmem:[%s1693_s3 + $0x90] sm:$0xff]  ;;  %v236_v42 = vlaneseq  ;;  %s708_s9 = sshll.u32 %s1048_s21, 3  ;;  %s694_s20 = scalar_lea.vmem %s1696_s6, %s1048_s21  ;;  %s1048_s21 = sphi %s1088_s21, %s40_s21  }
   0x6   : > { %945 = vset.pattern.permute.xlu1 %v1051_v2  ;;  %944 = vset.pattern.permute.xlu0 %v1051_v2  ;;  %v44_v3 = vld [vmem:[%s1693_s3] sm:$0xff]  ;;  %v45_v5 = vld [vmem:[%s1693_s3 + $0x8] sm:$0xff]  ;;  %v63_v7 = vld [vmem:[%s1693_s3 + $0x98] sm:$0xff]  ;;  %s42_s12 = scalar_lea.vmem %s1690_s0, %s708_s9  ;;  %s40_s21 = sadd.s32 1, %s1048_s21  }
   0x7   : > { %158 = vperm.xlu0 %944, %v60_v1   ;;  %78 = vperm.xlu1 %945, %v44_v3   ;;  %v46_v8 = vld [vmem:[%s1693_s3 + $0x10] sm:$0xff]  ;;  %v47_v9 = vld [vmem:[%s1693_s3 + $0x18] sm:$0xff]  ;;  %v64_v10 = vld [vmem:[%s1693_s3 + $0xa0] sm:$0xff]  ;;  %v1216_v43 = vshrl.u32 %v236_v42, 7  ;;  %p37_p0 = scmp.ge.s32.totalorder %s40_s21, 64  }
   0x8   : > { %v65_v11 = vld [vmem:[%s1693_s3 + $0xa8] sm:$0xff]  ;;  %v48_v12 = vld [vmem:[%s1693_s3 + $0x20] sm:$0xff]  ;;  %v66_v14 = vld [vmem:[%s1693_s3 + $0xb0] sm:$0xff] }
   0x9   : > { %v49_v13 = vld [vmem:[%s1693_s3 + $0x28] sm:$0xff]  ;;  %v67_v15 = vld [vmem:[%s1693_s3 + $0xb8] sm:$0xff]  ;;  %v50_v16 = vld [vmem:[%s1693_s3 + $0x30] sm:$0xff]  ;;  %v238_v44 = vsub.s32 4, %v1216_v43 }
   0xa   : > { %v51_v17 = vld [vmem:[%s1693_s3 + $0x38] sm:$0xff]  ;;  %v68_v18 = vld [vmem:[%s1693_s3 + $0xc0] sm:$0xff]  ;;  %v69_v19 = vld [vmem:[%s1693_s3 + $0xc8] sm:$0xff] }
   0xb   : > { %163 = vperm.xlu0 %944, %v61_v4   ;;  %83 = vperm.xlu1 %945, %v45_v5   ;;  %v52_v20 = vld [vmem:[%s1693_s3 + $0x40] sm:$0xff]  ;;  %v53_v21 = vld [vmem:[%s1693_s3 + $0x48] sm:$0xff]  ;;  %v70_v22 = vld [vmem:[%s1693_s3 + $0xd0] sm:$0xff] }
   0xc   : > { %v71_v23 = vld [vmem:[%s1693_s3 + $0xd8] sm:$0xff]  ;;  %v54_v24 = vld [vmem:[%s1693_s3 + $0x50] sm:$0xff]  ;;  %v72_v26 = vld [vmem:[%s1693_s3 + $0xe0] sm:$0xff] }
   0xd   : > { %v55_v25 = vld [vmem:[%s1693_s3 + $0x58] sm:$0xff]  ;;  %v73_v27 = vld [vmem:[%s1693_s3 + $0xe8] sm:$0xff]  ;;  %v56_v28 = vld [vmem:[%s1693_s3 + $0x60] sm:$0xff] }
   0xe   : > { %v57_v29 = vld [vmem:[%s1693_s3 + $0x68] sm:$0xff]  ;;  %v74_v30 = vld [vmem:[%s1693_s3 + $0xf0] sm:$0xff]  ;;  %v75_v31 = vld [vmem:[%s1693_s3 + $0xf8] sm:$0xff] }
   0xf   : > { %168 = vperm.xlu0 %944, %v62_v6   ;;  %173 = vperm.xlu1 %945, %v63_v7   ;;  %v58_v32 = vld [vmem:[%s1693_s3 + $0x70] sm:$0xff]  ;;  %v59_v33 = vld [vmem:[%s1693_s3 + $0x78] sm:$0xff]  ;;  %v380_v34 = vld [vmem:[%s1695_s5] sm:$0xff] }
  0x10   : > { %v381_v35 = vld [vmem:[%s1695_s5 + $0x8] sm:$0xff]  ;;  %v384_v36 = vld [vmem:[%s1695_s5 + $0x20] sm:$0xff]  ;;  %v382_v38 = vld [vmem:[%s1695_s5 + $0x10] sm:$0xff] }
  0x11   : > { %v385_v37 = vld [vmem:[%s1695_s5 + $0x28] sm:$0xff]  ;;  %v383_v39 = vld [vmem:[%s1695_s5 + $0x18] sm:$0xff]  ;;  %v1222_v45 = vld [vmem:[%s42_s12] sm:$0x1f] }
  0x12   : > { %v369_v40 = vld [vmem:[%s1694_s4 + $0x8] sm:$0xff]  ;;  %v375_v41 = vld [vmem:[%s1694_s4 + $0x38] sm:$0xff]  ;;  %v1225_v46 = vrot.slane %v1222_v45, %v238_v44  ;;  %v288_v47 = vld [vmem:[%s1692_s2 + $0x80] sm:$0xff] }
  0x13   : > { %88 = vperm.xlu0 %944, %v46_v8   ;;  %93 = vperm.xlu1 %945, %v47_v9   ;;  %v272_v51 = vld [vmem:[%s1692_s2] sm:$0xff]  ;;  %v289_v55 = vld [vmem:[%s1692_s2 + $0x88] sm:$0xff]  ;;  %v290_v63 = vld [vmem:[%s1692_s2 + $0x90] sm:$0xff] }
  0x14   : > { %480 = vmatprep.mubr.f32.mxu0 %v369_v40  ;;  %495 = vmatprep.mubr.f32.mxu1 %v375_v41  ;;  %v273_v57 = vld [vmem:[%s1692_s2 + $0x8] sm:$0xff]  ;;  %v291_v1 = vld [vmem:[%s1692_s2 + $0x98] sm:$0xff]  ;;  %v274_v8 = vld [vmem:[%s1692_s2 + $0x10] sm:$0xff] }
  0x15   : > { %v294_v40 = vld [vmem:[%s1692_s2 + $0xb0] sm:$0xff]  ;;  %v295_v42 = vld [vmem:[%s1692_s2 + $0xb8] sm:$0xff] }
  0x17   : > { %178 = vperm.xlu0 %944, %v64_v10   ;;  %183 = vperm.xlu1 %945, %v65_v11   ;;  %v275_v10 = vld [vmem:[%s1692_s2 + $0x18] sm:$0xff] }
  0x1b   : > { %98 = vperm.xlu0 %944, %v48_v12   ;;  %103 = vperm.xlu1 %945, %v49_v13  }
  0x1f   : > { %188 = vperm.xlu0 %944, %v66_v14   ;;  %193 = vperm.xlu1 %945, %v67_v15  }
  0x23   : > { %108 = vperm.xlu0 %944, %v50_v16   ;;  %113 = vperm.xlu1 %945, %v51_v17   ;;  %v292_v16 = vld [vmem:[%s1692_s2 + $0xa0] sm:$0xff] }
  0x27   : > { %198 = vperm.xlu0 %944, %v68_v18   ;;  %203 = vperm.xlu1 %945, %v69_v19   ;;  %v293_v18 = vld [vmem:[%s1692_s2 + $0xa8] sm:$0xff] }
  0x2b   : > { %118 = vperm.xlu0 %944, %v52_v20   ;;  %123 = vperm.xlu1 %945, %v53_v21  }
  0x2f   : > { %208 = vperm.xlu0 %944, %v70_v22   ;;  %213 = vperm.xlu1 %945, %v71_v23  }
  0x33   : > { %128 = vperm.xlu0 %944, %v54_v24   ;;  %133 = vperm.xlu1 %945, %v55_v25  }
  0x37   : > { %218 = vperm.xlu0 %944, %v72_v26   ;;  %223 = vperm.xlu1 %945, %v73_v27  }
  0x3b   : > { %138 = vperm.xlu0 %944, %v56_v28   ;;  %143 = vperm.xlu1 %945, %v57_v29   ;;  %v276_v28 = vld [vmem:[%s1692_s2 + $0x20] sm:$0xff] }
  0x3f   : > { %228 = vperm.xlu0 %944, %v74_v30   ;;  %233 = vperm.xlu1 %945, %v75_v31   ;;  %v277_v30 = vld [vmem:[%s1692_s2 + $0x28] sm:$0xff] }
  0x43   : > { %148 = vperm.xlu0 %944, %v58_v32   ;;  %153 = vperm.xlu1 %945, %v59_v33  }
  0x47   : > { %388 = vperm.xlu0 %944, %v380_v34   ;;  %393 = vperm.xlu1 %945, %v381_v35  }
  0x4b   : > { %408 = vperm.xlu0 %944, %v384_v36   ;;  %413 = vperm.xlu1 %945, %v385_v37  }
  0x4f   : > { %398 = vperm.xlu0 %944, %v382_v38   ;;  %403 = vperm.xlu1 %945, %v383_v39  }
  0x86   : > { %v159_v48 = vpop.permute.xlu0 %158  ;;  %v79_v49 = vpop.permute.xlu1 %78 }
  0x87   : > { %v256_v50 = vmul.f32 %v1225_v46, %v159_v48  ;;  %v240_v52 = vmul.f32 %v1225_v46, %v79_v49 }
  0x89   : > { %v320_v53 = vadd.f32 %v288_v47, %v256_v50  ;;  %v304_v54 = vadd.f32 %v272_v51, %v240_v52 }
  0x8a   : > { %v164_v56 = vpop.permute.xlu0 %163  ;;  %v84_v58 = vpop.permute.xlu1 %83 }
  0x8b   : > { %v257_v59 = vmul.f32 %v1225_v46, %v164_v56  ;;  %v241_v60 = vmul.f32 %v1225_v46, %v84_v58  ;;  %946 = vtanh.f32 %v320_v53  ;;  %v279_v56 = vld [vmem:[%s1692_s2 + $0x38] sm:$0xff] }
  0x8c   : > { %948 = vtanh.f32 %v304_v54  ;;  %v278_v54 = vld [vmem:[%s1692_s2 + $0x30] sm:$0xff] }
  0x8d   : > { %v321_v61 = vadd.f32 %v289_v55, %v257_v59  ;;  %v305_v62 = vadd.f32 %v273_v57, %v241_v60 }
  0x8e   : > { %v169_v0 = vpop.permute.xlu0 %168  ;;  %v174_v3 = vpop.permute.xlu1 %173 }
  0x8f   : > { %950 = vtanh.f32 %v321_v61  ;;  %v258_v4 = vmul.f32 %v1225_v46, %v169_v0  ;;  %v259_v5 = vmul.f32 %v1225_v46, %v174_v3 }
  0x90   : > { %952 = vtanh.f32 %v305_v62 }
  0x91   : > { %v322_v6 = vadd.f32 %v290_v63, %v258_v4  ;;  %v323_v7 = vadd.f32 %v291_v1, %v259_v5  ;;  %v296_v1 = vld [vmem:[%s1692_s2 + $0xc0] sm:$0xff]  ;;  %v297_v4 = vld [vmem:[%s1692_s2 + $0xc8] sm:$0xff] }
  0x92   : > { %v89_v9 = vpop.permute.xlu0 %88  ;;  %v94_v11 = vpop.permute.xlu1 %93 }
  0x93   : > { %954 = vtanh.f32 %v322_v6  ;;  %v242_v12 = vmul.f32 %v1225_v46, %v89_v9  ;;  %v243_v13 = vmul.f32 %v1225_v46, %v94_v11 }
  0x94   : > { %956 = vtanh.f32 %v323_v7 }
  0x95   : > { %v306_v14 = vadd.f32 %v274_v8, %v242_v12  ;;  %v307_v15 = vadd.f32 %v275_v10, %v243_v13  ;;  %v947_v20 = vpop.eup %946  ;;  %v280_v13 = vld [vmem:[%s1692_s2 + $0x40] sm:$0xff] }
  0x96   : > { %v179_v17 = vpop.permute.xlu0 %178  ;;  %v184_v19 = vpop.permute.xlu1 %183 }
  0x97   : > { %958 = vtanh.f32 %v306_v14  ;;  %v260_v21 = vmul.f32 %v1225_v46, %v179_v17  ;;  %v261_v22 = vmul.f32 %v1225_v46, %v184_v19  ;;  %v949_v23 = vpop.eup %948 }
  0x98   : > { %960 = vtanh.f32 %v307_v15  ;;  %v281_v15 = vld [vmem:[%s1692_s2 + $0x48] sm:$0xff] }
  0x99   : > { %v951_v24 = vpop.eup %950  ;;  %v324_v25 = vadd.f32 %v292_v16, %v260_v21  ;;  %v325_v26 = vadd.f32 %v293_v18, %v261_v22 }
  0x9a   : > { %v953_v27 = vpop.eup %952  ;;  %v99_v29 = vpop.permute.xlu0 %98  ;;  %v781_v32 = vpack.c.bf16 %v951_v24, %v947_v20  ;;  %v298_v24 = vld [vmem:[%s1692_s2 + $0xd0] sm:$0xff] }
  0x9b   : > { %v104_v31 = vpop.permute.xlu1 %103  ;;  %962 = vtanh.f32 %v324_v25  ;;  %v244_v33 = vmul.f32 %v1225_v46, %v99_v29  ;;  %v783_v35 = vpack.c.bf16 %v953_v27, %v949_v23 }
  0x9c   : > { %v245_v34 = vmul.f32 %v1225_v46, %v104_v31  ;;  %964 = vtanh.f32 %v325_v26  ;;  %782 = vmatprep.subr.bf16.mxu0 %v781_v32  ;;  %813 = vmatprep.subr.bf16.mxu1 %v781_v32  ;;  %v299_v26 = vld [vmem:[%s1692_s2 + $0xd8] sm:$0xff] }
  0x9d   : > { %v955_v36 = vpop.eup %954  ;;  %v308_v37 = vadd.f32 %v276_v28, %v244_v33  ;;  %784 = vmatpush3.bf16.msra.mxu0 %v783_v35  ;;  %821 = vmatpush3.bf16.msra.mxu1 %v783_v35  ;;  %v282_v35 = vld [vmem:[%s1692_s2 + $0x50] sm:$0xff] }
  0x9e   : > { %v309_v38 = vadd.f32 %v277_v30, %v245_v34  ;;  %v957_v39 = vpop.eup %956  ;;  %v189_v41 = vpop.permute.xlu0 %188 }
  0x9f   : > { %v194_v44 = vpop.permute.xlu1 %193  ;;  %966 = vtanh.f32 %v308_v37  ;;  %v262_v47 = vmul.f32 %v1225_v46, %v189_v41  ;;  %v785_v49 = vpack.c.bf16 %v957_v39, %v955_v36  ;;  %v283_v37 = vld [vmem:[%s1692_s2 + $0x58] sm:$0xff] }
  0xa0   : > { %v263_v48 = vmul.f32 %v1225_v46, %v194_v44  ;;  %968 = vtanh.f32 %v309_v38 }
  0xa1   : > { %v959_v50 = vpop.eup %958  ;;  %v326_v51 = vadd.f32 %v294_v40, %v262_v47  ;;  %786 = vmatprep.subr.bf16.mxu0 %v785_v49  ;;  %814 = vmatprep.subr.bf16.mxu1 %v785_v49  ;;  %v300_v49 = vld [vmem:[%s1692_s2 + $0xe0] sm:$0xff] }
  0xa2   : > { %v327_v52 = vadd.f32 %v295_v42, %v263_v48  ;;  %v961_v53 = vpop.eup %960  ;;  %v109_v55 = vpop.permute.xlu0 %108 }
  0xa3   : > { %v114_v57 = vpop.permute.xlu1 %113  ;;  %970 = vtanh.f32 %v326_v51  ;;  %v246_v58 = vmul.f32 %v1225_v46, %v109_v55  ;;  %v787_v60 = vpack.c.bf16 %v961_v53, %v959_v50  ;;  %v301_v51 = vld [vmem:[%s1692_s2 + $0xe8] sm:$0xff] }
  0xa4   : > { %v247_v59 = vmul.f32 %v1225_v46, %v114_v57  ;;  %972 = vtanh.f32 %v327_v52 }
  0xa5   : > { %v963_v61 = vpop.eup %962  ;;  %v310_v62 = vadd.f32 %v278_v54, %v246_v58  ;;  %788 = vmatpush3.bf16.msra.mxu0 %v787_v60  ;;  %822 = vmatpush3.bf16.msra.mxu1 %v787_v60  ;;  %v284_v60 = vld [vmem:[%s1692_s2 + $0x60] sm:$0xff] }
  0xa6   : > { %v311_v63 = vadd.f32 %v279_v56, %v247_v59  ;;  %v965_v0 = vpop.eup %964  ;;  %v199_v3 = vpop.permute.xlu0 %198 }
  0xa7   : > { %v204_v5 = vpop.permute.xlu1 %203  ;;  %974 = vtanh.f32 %v310_v62  ;;  %v264_v6 = vmul.f32 %v1225_v46, %v199_v3  ;;  %v789_v8 = vpack.c.bf16 %v965_v0, %v963_v61  ;;  %v285_v62 = vld [vmem:[%s1692_s2 + $0x68] sm:$0xff] }
  0xa8   : > { %v265_v7 = vmul.f32 %v1225_v46, %v204_v5  ;;  %976 = vtanh.f32 %v311_v63 }
  0xa9   : > { %v967_v9 = vpop.eup %966  ;;  %v328_v10 = vadd.f32 %v296_v1, %v264_v6  ;;  %790 = vmatprep.subr.bf16.mxu0 %v789_v8  ;;  %815 = vmatprep.subr.bf16.mxu1 %v789_v8  ;;  %v302_v8 = vld [vmem:[%s1692_s2 + $0xf0] sm:$0xff] }
  0xaa   : > { %v329_v11 = vadd.f32 %v297_v4, %v265_v7  ;;  %v969_v12 = vpop.eup %968  ;;  %v119_v14 = vpop.permute.xlu0 %118 }
  0xab   : > { %v124_v16 = vpop.permute.xlu1 %123  ;;  %978 = vtanh.f32 %v328_v10  ;;  %v248_v17 = vmul.f32 %v1225_v46, %v119_v14  ;;  %v791_v19 = vpack.c.bf16 %v969_v12, %v967_v9  ;;  %v303_v10 = vld [vmem:[%s1692_s2 + $0xf8] sm:$0xff] }
  0xac   : > { %v249_v18 = vmul.f32 %v1225_v46, %v124_v16  ;;  %980 = vtanh.f32 %v329_v11 }
  0xad   : > { %v971_v20 = vpop.eup %970  ;;  %v312_v21 = vadd.f32 %v280_v13, %v248_v17  ;;  %792 = vmatpush3.bf16.msra.mxu0 %v791_v19  ;;  %823 = vmatpush3.bf16.msra.mxu1 %v791_v19  ;;  %v286_v19 = vld [vmem:[%s1692_s2 + $0x70] sm:$0xff] }
  0xae   : > { %v313_v22 = vadd.f32 %v281_v15, %v249_v18  ;;  %v973_v23 = vpop.eup %972  ;;  %v209_v25 = vpop.permute.xlu0 %208 }
  0xaf   : > { %v214_v27 = vpop.permute.xlu1 %213  ;;  %982 = vtanh.f32 %v312_v21  ;;  %v266_v28 = vmul.f32 %v1225_v46, %v209_v25  ;;  %v793_v30 = vpack.c.bf16 %v973_v23, %v971_v20  ;;  %v287_v21 = vld [vmem:[%s1692_s2 + $0x78] sm:$0xff] }
  0xb0   : > { %v267_v29 = vmul.f32 %v1225_v46, %v214_v27  ;;  %984 = vtanh.f32 %v313_v22 }
  0xb1   : > { %v975_v31 = vpop.eup %974  ;;  %v330_v32 = vadd.f32 %v298_v24, %v266_v28  ;;  %794 = vmatprep.subr.bf16.mxu0 %v793_v30  ;;  %816 = vmatprep.subr.bf16.mxu1 %v793_v30 }
  0xb2   : > { %v331_v33 = vadd.f32 %v299_v26, %v267_v29  ;;  %v977_v34 = vpop.eup %976  ;;  %v129_v36 = vpop.permute.xlu0 %128 }
  0xb3   : > { %v134_v38 = vpop.permute.xlu1 %133  ;;  %986 = vtanh.f32 %v330_v32  ;;  %v250_v39 = vmul.f32 %v1225_v46, %v129_v36  ;;  %v795_v41 = vpack.c.bf16 %v977_v34, %v975_v31 }
  0xb4   : > { %v251_v40 = vmul.f32 %v1225_v46, %v134_v38  ;;  %988 = vtanh.f32 %v331_v33 }
  0xb5   : > { %v979_v42 = vpop.eup %978  ;;  %v314_v44 = vadd.f32 %v282_v35, %v250_v39  ;;  %796 = vmatpush3.bf16.msra.mxu0 %v795_v41  ;;  %824 = vmatpush3.bf16.msra.mxu1 %v795_v41  ;;  %v368_v39 = vld [vmem:[%s1694_s4] sm:$0xff]  ;;  %v371_v41 = vld [vmem:[%s1694_s4 + $0x18] sm:$0xff] }
  0xb6   : > { %v315_v47 = vadd.f32 %v283_v37, %v251_v40  ;;  %v981_v48 = vpop.eup %980  ;;  %v219_v50 = vpop.permute.xlu0 %218  ;;  %v374_v40 = vld [vmem:[%s1694_s4 + $0x30] sm:$0xff] }
  0xb7   : > { %v224_v52 = vpop.permute.xlu1 %223  ;;  %990 = vtanh.f32 %v314_v44  ;;  %v268_v53 = vmul.f32 %v1225_v46, %v219_v50  ;;  %v797_v55 = vpack.c.bf16 %v981_v48, %v979_v42  ;;  %v377_v42 = vld [vmem:[%s1694_s4 + $0x48] sm:$0xff]  ;;  %v370_v44 = vld [vmem:[%s1694_s4 + $0x10] sm:$0xff]  ;;  %v372_v50 = vld [vmem:[%s1694_s4 + $0x20] sm:$0xff] }
  0xb8   : > { %v269_v54 = vmul.f32 %v1225_v46, %v224_v52  ;;  %992 = vtanh.f32 %v315_v47  ;;  %v376_v47 = vld [vmem:[%s1694_s4 + $0x40] sm:$0xff]  ;;  %v373_v48 = vld [vmem:[%s1694_s4 + $0x28] sm:$0xff]  ;;  %v601_v52 = vsub.s32 1, %v1216_v43 }
  0xb9   : > { %v983_v56 = vpop.eup %982  ;;  %v332_v57 = vadd.f32 %v300_v49, %v268_v53  ;;  %798 = vmatprep.subr.bf16.mxu0 %v797_v55  ;;  %817 = vmatprep.subr.bf16.mxu1 %v797_v55  ;;  %v379_v49 = vld [vmem:[%s1694_s4 + $0x58] sm:$0xff]  ;;  %v595_v53 = vsub.s32 0, %v1216_v43  ;;  %v549_v55 = vld [vmem:[%s1691_s1] sm:$0xff] }
  0xba   : > { %v333_v58 = vadd.f32 %v301_v51, %v269_v54  ;;  %v985_v59 = vpop.eup %984  ;;  %v139_v61 = vpop.permute.xlu0 %138  ;;  %v378_v51 = vld [vmem:[%s1694_s4 + $0x50] sm:$0xff]  ;;  %v602_v54 = vrot.slane %v1222_v45, %v601_v52 }
  0xbb   : > { %v144_v63 = vpop.permute.xlu1 %143  ;;  %994 = vtanh.f32 %v332_v57  ;;  %v252_v0 = vmul.f32 %v1225_v46, %v139_v61  ;;  %v799_v3 = vpack.c.bf16 %v985_v59, %v983_v56  ;;  %v596_v56 = vrot.slane %v1222_v45, %v595_v53  ;;  %v550_v61 = vld [vmem:[%s1691_s1 + $0x8] sm:$0xff] }
  0xbc   : > { %v253_v1 = vmul.f32 %v1225_v46, %v144_v63  ;;  %996 = vtanh.f32 %v333_v58  ;;  %v603_v57 = vmul.f32 %v602_v54, %v549_v55  ;;  %v591_v58 = vld [vmem:[#allocation2] sm:$0xff] }
  0xbd   : > { %v987_v4 = vpop.eup %986  ;;  %v316_v5 = vadd.f32 %v284_v60, %v252_v0  ;;  %800 = vmatpush3.bf16.msra.mxu0 %v799_v3  ;;  %825 = vmatpush3.bf16.msra.mxu1 %v799_v3  ;;  %v597_v59 = vadd.f32 %v596_v56, %v591_v58  ;;  %v592_v0 = vld [vmem:[#allocation2 + $0x8] sm:$0xff]  ;;  %v587_v58 = vsub.s32 2, %v1216_v43 }
  0xbe   : > { %v317_v6 = vadd.f32 %v285_v62, %v253_v1  ;;  %v989_v7 = vpop.eup %988  ;;  %v229_v9 = vpop.permute.xlu0 %228  ;;  %v605_v60 = vmax.f32 %v603_v57, 0.0  ;;  %v604_v62 = vmul.f32 %v602_v54, %v550_v61  ;;  %v598_v3 = vadd.f32 %v596_v56, %v592_v0 }
  0xbf   : > { %v234_v11 = vpop.permute.xlu1 %233  ;;  %998 = vtanh.f32 %v316_v5  ;;  %v270_v12 = vmul.f32 %v1225_v46, %v229_v9  ;;  %v801_v14 = vpack.c.bf16 %v989_v7, %v987_v4  ;;  %v579_v54 = vsub.s32 3, %v1216_v43  ;;  %v610_v43 = vld [vmem:[#allocation3 + $0x8] sm:$0xff] }
  0xc0   : > { %v271_v13 = vmul.f32 %v1225_v46, %v234_v11  ;;  %1000 = vtanh.f32 %v317_v6  ;;  %v1395_v63 = vmin.f32 %v597_v59, %v605_v60  ;;  %v606_v4 = vmax.f32 %v604_v62, 0.0 }
  0xc1   : > { %v991_v15 = vpop.eup %990  ;;  %v334_v16 = vadd.f32 %v302_v8, %v270_v12  ;;  %802 = vmatprep.subr.bf16.mxu0 %v801_v14  ;;  %818 = vmatprep.subr.bf16.mxu1 %v801_v14  ;;  %v580_v60 = vrot.slane %v1222_v45, %v579_v54  ;;  %v653_v54 = vld [vmem:[#allocation5] sm:$0xff] }
  0xc2   : > { %v335_v17 = vadd.f32 %v303_v10, %v271_v13  ;;  %v993_v18 = vpop.eup %992  ;;  %v149_v20 = vpop.permute.xlu0 %148  ;;  %v663_v1 = vsub.f32 %v597_v59, %v1395_v63  ;;  %v1398_v5 = vmin.f32 %v598_v3, %v606_v4 }
  0xc3   : > { %v154_v22 = vpop.permute.xlu1 %153  ;;  %1002 = vtanh.f32 %v334_v16  ;;  %v254_v23 = vmul.f32 %v1225_v46, %v149_v20  ;;  %v803_v25 = vpack.c.bf16 %v993_v18, %v991_v15 }
  0xc4   : > { %v255_v24 = vmul.f32 %v1225_v46, %v154_v22  ;;  %1004 = vtanh.f32 %v335_v17  ;;  %665 = vst [vmem:[#allocation2] sm:$0xff] %v663_v1  ;;  %v664_v6 = vsub.f32 %v598_v3, %v1398_v5  ;;  %v588_v1 = vrot.slane %v1222_v45, %v587_v58 }
  0xc5   : > { %v995_v26 = vpop.eup %994  ;;  %v318_v27 = vadd.f32 %v286_v19, %v254_v23  ;;  %804 = vmatpush3.bf16.msra.mxu0 %v803_v25  ;;  %826 = vmatpush3.bf16.msra.mxu1 %v803_v25 }
  0xc6   : > { %v319_v28 = vadd.f32 %v287_v21, %v255_v24  ;;  %v997_v29 = vpop.eup %996  ;;  %666 = vst [vmem:[#allocation2 + $0x8] sm:$0xff] %v664_v6  ;;  %v389_v7 = vpop.permute.xlu0 %388  ;;  %v609_v6 = vld [vmem:[#allocation3] sm:$0xff] }
  0xc7   : > { %1006 = vtanh.f32 %v318_v27  ;;  %v805_v30 = vpack.c.bf16 %v997_v29, %v995_v26  ;;  %v394_v8 = vpop.permute.xlu1 %393 }
  0xc8   : > { %1008 = vtanh.f32 %v319_v28 }
  0xc9   : > { %v999_v31 = vpop.eup %998  ;;  %806 = vmatprep.subr.bf16.mxu0 %v805_v30  ;;  %819 = vmatprep.subr.bf16.mxu1 %v805_v30 }
  0xca   : > { %v1001_v32 = vpop.eup %1000  ;;  %v409_v15 = vpop.permute.xlu0 %408 }
  0xcb   : > { %v807_v33 = vpack.c.bf16 %v1001_v32, %v999_v31  ;;  %v414_v16 = vpop.permute.xlu1 %413 }
  0xcd   : > { %v1003_v34 = vpop.eup %1002  ;;  %808 = vmatpush3.bf16.msra.mxu0 %v807_v33  ;;  %827 = vmatpush3.bf16.msra.mxu1 %v807_v33 }
  0xce   : > { %v1005_v46 = vpop.eup %1004 }
  0xcf   : > { %v809_v35 = vpack.c.bf16 %v1005_v46, %v1003_v34  ;;  %v399_v46 = vpop.permute.xlu0 %398 }
  0xd1   : > { %v1007_v36 = vpop.eup %1006  ;;  %810 = vmatprep.subr.bf16.mxu0 %v809_v35  ;;  %820 = vmatprep.subr.bf16.mxu1 %v809_v35  ;;  %v404_v35 = vpop.permute.xlu1 %403 }
  0xd2   : > { %v1009_v37 = vpop.eup %1008 }
  0xd3   : > { %v811_v38 = vpack.c.bf16 %v1009_v37, %v1007_v36 }
  0xd5   : > { %812 = vmatpush3.bf16.msra.mxu0 %v811_v38  ;;  %828 = vmatpush3.bf16.msra.mxu1 %v811_v38 }
  0xd8   : > { %481 = vmatmul.mubr.f32.vlgmr.msra.gmra.mrb[0].mxu0 %v368_v39  ;;  %496 = vmatmul.mubr.f32.vlgmr.msra.gmra.mrb[0].mxu1 %v374_v40 }
  0xd9   : > { %485 = vmatprep.mubr.f32.mxu0 %v371_v41  ;;  %500 = vmatprep.mubr.f32.mxu1 %v377_v42 }
  0xdc   : > { %486 = vmatmul.mubr.f32.gmra.mrb[2].mxu0 %v370_v44  ;;  %501 = vmatmul.mubr.f32.gmra.mrb[2].mxu1 %v376_v47 }
  0xdd   : > { %490 = vmatprep.mubr.f32.mxu0 %v373_v48  ;;  %505 = vmatprep.mubr.f32.mxu1 %v379_v49 }
  0xe0   : > { %491 = vmatmul.mubr.f32.gmra.mrb[4].mxu0 %v372_v50  ;;  %506 = vmatmul.mubr.f32.gmra.mrb[4].mxu1 %v378_v51 }
 0x1ab   : > { %v763_v9 = vpop.f32.mrb[0].mxu0  ;;  %v772_v10 = vpop.f32.mrb[0].mxu1 }
 0x1ac   : > { %v764_v11 = vpop.f32.mrb[1].mxu0  ;;  %v773_v12 = vpop.f32.mrb[1].mxu1 }
 0x1ad   : > { %v765_v13 = vadd.f32 %v764_v11, %v763_v9  ;;  %v774_v14 = vadd.f32 %v773_v12, %v772_v10  ;;  %v619_v12 = vld [vmem:[#allocation4] sm:$0xff] }
 0x1ae   : > { %v621_v45 = vadd.f32 %v619_v12, %v1395_v63 }
 0x1af   : > { %v483_v17 = vadd.f32 %v765_v13, %v389_v7  ;;  %v766_v18 = vpop.f32.mrb[2].mxu0  ;;  %v775_v19 = vpop.f32.mrb[2].mxu1  ;;  %v498_v36 = vadd.f32 %v774_v14, %v404_v35  ;;  %v723_v35 = vld [vmem:[%s1691_s1 + $0x50] sm:$0xff] }
 0x1b0   : > { %v767_v20 = vpop.f32.mrb[3].mxu0  ;;  %v776_v21 = vpop.f32.mrb[3].mxu1 }
 0x1b1   : > { %v709_v22 = vmul.f32 -1.442695, %v483_v17  ;;  %v768_v23 = vadd.f32 %v767_v20, %v766_v18  ;;  %v777_v24 = vadd.f32 %v776_v21, %v775_v19  ;;  %v712_v41 = vmul.f32 -1.442695, %v498_v36  ;;  %v620_v20 = vld [vmem:[#allocation4 + $0x8] sm:$0xff] }
 0x1b3   : > { %1010 = vpow2.f32 %v709_v22  ;;  %v488_v25 = vadd.f32 %v768_v23, %v394_v8  ;;  %v503_v26 = vadd.f32 %v777_v24, %v409_v15  ;;  %v769_v27 = vpop.f32.mrb[4].mxu0  ;;  %v778_v28 = vpop.f32.mrb[4].mxu1  ;;  %v729_v15 = vld [vmem:[%s1691_s1 + $0x80] sm:$0xff]  ;;  %v730_v24 = vld [vmem:[%s1691_s1 + $0x88] sm:$0xff] }
 0x1b4   : > { %v770_v29 = vpop.f32.mrb[5].mxu0  ;;  %v779_v30 = vpop.f32.mrb[5].mxu1  ;;  %v625_v22 = vmul.f32 %v729_v15, %v588_v1 }
 0x1b5   : > { %v710_v31 = vmul.f32 -1.442695, %v488_v25  ;;  %v713_v32 = vmul.f32 -1.442695, %v503_v26  ;;  %v771_v33 = vadd.f32 %v770_v29, %v769_v27  ;;  %v780_v34 = vadd.f32 %v779_v30, %v778_v28 }
 0x1b6   : > { %v622_v28 = vadd.f32 %v620_v20, %v1398_v5  ;;  %v717_v5 = vld [vmem:[%s1691_s1 + $0x20] sm:$0xff] }
 0x1b7   : > { %1012 = vpow2.f32 %v710_v31  ;;  %v493_v37 = vadd.f32 %v771_v33, %v399_v46  ;;  %v508_v38 = vadd.f32 %v780_v34, %v414_v16 }
 0x1b8   : > { %1014 = vpow2.f32 %v713_v32  ;;  %v626_v32 = vmul.f32 %v730_v24, %v588_v1 }
 0x1b9   : > { %v711_v39 = vmul.f32 -1.442695, %v493_v37  ;;  %v714_v40 = vmul.f32 -1.442695, %v508_v38 }
 0x1bb   : > { %1016 = vpow2.f32 %v711_v39 }
 0x1bc   : > { %1018 = vpow2.f32 %v714_v40 }
 0x1bd   : > { %v1011_v42 = vpop.eup %1010  ;;  %1020 = vpow2.f32 %v712_v41 }
 0x1be   : > { %v529_v44 = vadd.f32 1.0, %v1011_v42  ;;  %v1426_v42 = vld [vmem:[%s1691_s1 + $0x10] sm:$0xff] }
 0x1bf   : > { %vm837_vm12 = vcmp.lt.f32.partialorder %v1426_v42, 0 }
 0x1c0   : > { %1022 = vrcp.f32 %v529_v44 }
 0x1c1   : > { %v1013_v47 = vpop.eup %1012 }
 0x1c2   : > { %v1015_v48 = vpop.eup %1014  ;;  %v530_v49 = vadd.f32 1.0, %v1013_v47 }
 0x1c3   : > { %v533_v50 = vadd.f32 1.0, %v1015_v48  ;;  %v724_v48 = vld [vmem:[%s1691_s1 + $0x58] sm:$0xff] }
 0x1c4   : > { %1024 = vrcp.f32 %v530_v49 }
 0x1c5   : > { %v1017_v51 = vpop.eup %1016  ;;  %1026 = vrcp.f32 %v533_v50  ;;  %v1440_v50 = vld [vmem:[%s1691_s1 + $0x30] sm:$0xff] }
 0x1c6   : > { %v1019_v52 = vpop.eup %1018  ;;  %v531_v56 = vadd.f32 1.0, %v1017_v51  ;;  %v1443_v51 = vand.u32 2147483647, %v1426_v42 }
 0x1c7   : > { %v534_v53 = vadd.f32 1.0, %v1019_v52  ;;  %v1021_v55 = vpop.eup %1020 }
 0x1c8   : > { %v532_v61 = vadd.f32 1.0, %v1021_v55  ;;  %vm1700_vm2 = vcmp.eq.f32.partialorder %v1443_v51, 2139095040  ;;  %vm841_vm10 = vcmp.lt.f32.partialorder %v1443_v51, 1266679808 }
 0x1c9   : > { %1028 = vrcp.f32 %v534_v53 }
 0x1ca   : > { %v1023_v57 = vpop.eup %1022  ;;  %1030 = vrcp.f32 %v531_v56 }
 0x1cb   : > { %v575_v59 = vsub.f32 1.0, %v1023_v57  ;;  %1032 = vrcp.f32 %v532_v61  ;;  %v583_v30 = vmul.f32 %v1023_v57, %v580_v60  ;;  %v1458_v57 = vld [vmem:[%s1691_s1 + $0x18] sm:$0xff]  ;;  %v842_v61 = vtrunc.f32 %v1443_v51 }
 0x1cd   : > { %v581_v0 = vmul.f32 %v580_v60, %v575_v59  ;;  %v718_v59 = vld [vmem:[%s1691_s1 + $0x28] sm:$0xff] }
 0x1ce   : > { %v1025_v62 = vpop.eup %1024 }
 0x1cf   : > { %v1027_v3 = vpop.eup %1026  ;;  %v576_v4 = vsub.f32 1.0, %v1025_v62  ;;  %v611_v9 = vadd.f32 %v609_v6, %v581_v0  ;;  %v584_v36 = vmul.f32 %v1025_v62, %v580_v60  ;;  %v1472_v0 = vand.u32 2147483647, %v1458_v57 }
 0x1d0   : > { %v547_v7 = vmul.f32 5.0, %v1027_v3  ;;  %v838_v6 = vtrunc.f32 %v1426_v42 }
 0x1d1   : > { %v582_v10 = vmul.f32 %v580_v60, %v576_v4  ;;  %v721_v60 = vld [vmem:[%s1691_s1 + $0x40] sm:$0xff]  ;;  %vm1698_vm5 = vcmp.eq.f32.partialorder %v1472_v0, 2139095040 }
 0x1d2   : > { %v589_v8 = vmul.f32 %v588_v1, %v547_v7  ;;  %vm839_vm3 = vcmp.ne.f32.partialorder %v1426_v42, %v838_v6 }
 0x1d3   : > { %v1029_v11 = vpop.eup %1028  ;;  %v612_v18 = vadd.f32 %v610_v43, %v582_v10  ;;  %v894_v43 = vtrunc.f32 %v1472_v0  ;;  %vm1511_vm4 = vmor %vm839_vm3, %vm1700_vm2 }
 0x1d4   : > { %v613_v13 = vsub.f32 %v611_v9, %v589_v8  ;;  %v548_v14 = vmul.f32 5.0, %v1029_v11  ;;  %v1031_v19 = vpop.eup %1030  ;;  %v1485_v8 = vld [vmem:[%s1691_s1 + $0x38] sm:$0xff]  ;;  %v843_v9 = vcvt.f32.s32 %v842_v61  ;;  %vm846_vm8 = vmneg %vm1511_vm4 }
 0x1d5   : > { %v1033_v29 = vpop.eup %1032  ;;  %v895_v20 = vcvt.f32.s32 %v894_v43 }
 0x1d6   : > { %v615_v16 = vmax.f32 %v613_v13, 0.0  ;;  %v590_v17 = vmul.f32 %v588_v1, %v548_v14  ;;  %v727_v1 = vld [vmem:[%s1691_s1 + $0x70] sm:$0xff]  ;;  %v654_v14 = vld [vmem:[#allocation5 + $0x8] sm:$0xff] }
 0x1d8   : > { %v617_v21 = vmul.f32 %v1031_v19, %v615_v16  ;;  %v614_v23 = vsub.f32 %v612_v18, %v590_v17  ;;  %v844_v17 = vand.u32 1, %v843_v9 }
 0x1da   : > { %v623_v25 = vadd.f32 %v621_v45, %v617_v21  ;;  %v667_v26 = vsub.f32 %v615_v16, %v617_v21  ;;  %v616_v27 = vmax.f32 %v614_v23, 0.0  ;;  %v890_v16 = vtrunc.f32 %v1458_v57  ;;  %v722_v45 = vld [vmem:[%s1691_s1 + $0x48] sm:$0xff]  ;;  %v728_v21 = vld [vmem:[%s1691_s1 + $0x78] sm:$0xff] }
 0x1db   : > { %vm845_vm7 = vcmp.eq.s32.totalorder %v844_v17, 1 }
 0x1dc   : > { %v627_v31 = vsub.f32 %v623_v25, %v625_v22  ;;  %669 = vst [vmem:[#allocation3] sm:$0xff] %v667_v26  ;;  %v618_v63 = vmul.f32 %v1033_v29, %v616_v27  ;;  %vm891_vm6 = vcmp.ne.f32.partialorder %v1458_v57, %v890_v16  ;;  %v896_v26 = vand.u32 1, %v895_v20  ;;  %vm847_vm11 = vmand %vm845_vm7, %vm846_vm8 }
 0x1dd   : > { %vm1527_vm9 = vmor %vm891_vm6, %vm1698_vm5 }
 0x1de   : > { %v629_v33 = vadd.f32 %v627_v31, %v583_v30  ;;  %v624_v34 = vadd.f32 %v622_v28, %v618_v63  ;;  %v668_v46 = vsub.f32 %v616_v27, %v618_v63  ;;  %vm897_vm14 = vcmp.eq.s32.totalorder %v896_v26, 1  ;;  %vm898_vm15 = vmneg %vm1527_vm9 }
 0x1df   : > { %vm1537_vm3 = vmand %vm841_vm10, %vm847_vm11  ;;  %v1052_v63 = vmov 2139095040   ;;  %vm889_vm11 = vcmp.lt.f32.partialorder %v1458_v57, 0 }
 0x1e0   : > { %v1416_v37 = vmax.f32 %v629_v33, 0.0  ;;  %v628_v38 = vsub.f32 %v624_v34, %v626_v32  ;;  %670 = vst [vmem:[#allocation3 + $0x8] sm:$0xff] %v668_v46  ;;  %v869_v32 = vsel %vm837_vm12, 0, %v1052_v63  ;;  %vm899_vm8 = vmand %vm897_vm14, %vm898_vm15 }
 0x1e1   : > { %v870_v46 = vxor.u32 2147483648, %v869_v32 }
 0x1e2   : > { %v633_v39 = vsub.f32 %v1416_v37, %v723_v35  ;;  %v645_v40 = vmin.f32 %v1416_v37, %v723_v35  ;;  %v630_v41 = vadd.f32 %v628_v38, %v584_v36  ;;  %v857_v35 = vsel %vm837_vm12, 2139095040, %v1051_v2 }
 0x1e4   : > { %v1428_v44 = vmax.f32 %v633_v39, 0.0  ;;  %v1430_v47 = vmul.f32 %v717_v5, %v645_v40  ;;  %v1435_v49 = vmax.f32 %v630_v41, 0.0  ;;  %v921_v5 = vsel %vm889_vm11, 0, %v1052_v63 }
 0x1e6   : > { %vm1699_vm0 = vcmp.gt.f32.partialorder %v1428_v44, 0.0  ;;  %v655_v52 = vmul.f32 %v1440_v50, %v1430_v47  ;;  %v634_v55 = vsub.f32 %v1435_v49, %v724_v48  ;;  %v646_v56 = vmin.f32 %v1435_v49, %v724_v48 }
 0x1e7   : > { %v1451_v53 = vsel %vm1699_vm0, %v1428_v44, 1.0  ;;  %v871_v48 = vsel %vm1537_vm3, %v870_v46, %v869_v32 }
 0x1e8   : > { %v1461_v58 = vand.u32 2147483647, %v1451_v53  ;;  %v657_v62 = vadd.f32 %v655_v52, %v653_v54  ;;  %v1477_v3 = vmax.f32 %v634_v55, 0.0  ;;  %v1479_v4 = vmul.f32 %v718_v59, %v646_v56 }
 0x1e9   : > { %vm850_vm6 = vcmp.eq.f32.partialorder %v1451_v53, 0  ;;  %vm849_vm10 = vcmp.lt.f32.partialorder %v1451_v53, 0  ;;  %v922_v55 = vxor.u32 2147483648, %v921_v5 }
 0x1ea   : > { %1034 = vlog2.f32 %v1461_v58  ;;  %v659_v7 = vmul.f32 %v721_v60, %v657_v62  ;;  %vm1697_vm1 = vcmp.gt.f32.partialorder %v1477_v3, 0.0  ;;  %v656_v12 = vmul.f32 %v1485_v8, %v1479_v4  ;;  %vm1558_vm5 = vmand %vm837_vm12, %vm850_vm6 }
 0x1eb   : > { %v1493_v11 = vsel %vm1697_vm1, %v1477_v3, 1.0  ;;  %vm853_vm13 = vcmp.gt.f32.partialorder %v1461_v58, 1065353216  ;;  %vm893_vm1 = vcmp.lt.f32.partialorder %v1472_v0, 1266679808  ;;  %vm855_vm15 = vmand %vm849_vm10, %vm1511_vm4  ;;  %v872_v6 = vsel %vm849_vm10, %v871_v48, %v869_v32 }
 0x1ec   : > { %v1488_v10 = vadd.f32 %v727_v1, %v659_v7  ;;  %v1499_v13 = vand.u32 2147483647, %v1493_v11  ;;  %v658_v18 = vadd.f32 %v656_v12, %v654_v14  ;;  %vm1547_vm7 = vmxor %vm837_vm12, %vm853_vm13  ;;  %vm852_vm13 = vcmp.lt.s32.totalorder %v1451_v53, 0 }
 0x1ed   : > { %vm864_vm14 = vmor %vm1558_vm5, %vm1547_vm7  ;;  %vm874_vm12 = vcmp.ne.f32.partialorder %v1451_v53, %v1451_v53  ;;  %vm875_vm5 = vcmp.ne.f32.partialorder %v1426_v42, %v1426_v42  ;;  %v649_v14 = vsub.f32 1.0, %v1440_v50 }
 0x1ee   : > { %v677_v15 = vsub.f32 %v657_v62, %v1488_v10  ;;  %1036 = vlog2.f32 %v1499_v13  ;;  %v660_v23 = vmul.f32 %v722_v45, %v658_v18  ;;  %vm905_vm0 = vcmp.gt.f32.partialorder %v1499_v13, 1065353216  ;;  %vm1575_vm2 = vmand %vm893_vm1, %vm899_vm8 }
 0x1ef   : > { %vm859_vm4 = vmand %vm852_vm13, %vm1537_vm3  ;;  %v865_v41 = vsel %vm864_vm14, 2139095040, %v1051_v2  ;;  %vm902_vm1 = vcmp.eq.f32.partialorder %v1493_v11, 0  ;;  %vm901_vm13 = vcmp.lt.f32.partialorder %v1493_v11, 0  ;;  %vm835_vm14 = vcmp.eq.f32.partialorder %v1426_v42, 0 }
 0x1f0   : > { %679 = vst [vmem:[#allocation5] sm:$0xff] %v677_v15  ;;  %v1523_v25 = vadd.f32 %v728_v21, %v660_v23  ;;  %vm1595_vm7 = vmxor %vm889_vm11, %vm905_vm0  ;;  %vm851_vm3 = vcmp.eq.f32.partialorder %v1451_v53, 1065353216  ;;  %v909_v62 = vsel %vm889_vm11, 2139095040, %v1051_v2 }
 0x1f1   : > { %vm1600_vm8 = vmor %vm874_vm12, %vm875_vm5  ;;  %vm1719_vm12 = vcmp.eq.f32.partialorder %v1443_v51, 2139095040  ;;  %v923_v51 = vsel %vm1575_vm2, %v922_v55, %v921_v5 }
 0x1f2   : > { %v678_v28 = vsub.f32 %v658_v18, %v1523_v25  ;;  %vm1611_vm0 = vmand %vm889_vm11, %vm902_vm1  ;;  %v924_v19 = vsel %vm901_vm13, %v923_v51, %v921_v5 }
 0x1f3   : > { %vm916_vm5 = vmor %vm1611_vm0, %vm1595_vm7  ;;  %vm904_vm7 = vcmp.lt.s32.totalorder %v1493_v11, 0  ;;  %vm903_vm0 = vcmp.eq.f32.partialorder %v1493_v11, 1065353216 }
 0x1f4   : > { %v1035_v22 = vpop.eup %1034  ;;  %680 = vst [vmem:[#allocation5 + $0x8] sm:$0xff] %v678_v28  ;;  %vm907_vm11 = vmand %vm901_vm13, %vm1527_vm9  ;;  %v917_v16 = vsel %vm916_vm5, 2139095040, %v1051_v2  ;;  %vm887_vm9 = vcmp.eq.f32.partialorder %v1458_v57, 0  ;;  %v726_v28 = vld [vmem:[%s1691_s1 + $0x68] sm:$0xff] }
 0x1f5   : > { %v831_v24 = vmul.f32 %v1035_v22, %v1426_v42  ;;  %vm878_vm10 = vmor %vm851_vm3, %vm835_vm14  ;;  %vm918_vm14 = vcmp.eq.f32.partialorder %v1493_v11, 3212836864  ;;  %vm927_vm3 = vcmp.ne.f32.partialorder %v1458_v57, %v1458_v57 }
 0x1f7   : > { %1038 = vpow2.f32 %v831_v24 }
 0x1f8   : > { %v1037_v29 = vpop.eup %1036 }
 0x1f9   : > { %v883_v31 = vmul.f32 %v1037_v29, %v1458_v57 }
 0x1fb   : > { %1040 = vpow2.f32 %v883_v31 }
 0x201   : > { %v1039_v36 = vpop.eup %1038 }
 0x202   : > { %v856_v39 = vsel %vm855_vm15, 2143289344, %v1039_v36  ;;  %vm854_vm15 = vcmp.eq.f32.partialorder %v1461_v58, 2139095040 }
 0x203   : > { %v858_v40 = vsel %vm850_vm6, %v857_v35, %v856_v39  ;;  %vm866_vm6 = vcmp.eq.f32.partialorder %v1451_v53, 3212836864 }
 0x204   : > { %v860_v52 = vxor.u32 2147483648, %v858_v40  ;;  %v867_v60 = vsel %vm866_vm6, 1065353216, %v865_v41  ;;  %vm1720_vm6 = vcmp.gt.f32.partialorder %v1428_v44, 0.0  ;;  %v651_v44 = vmul.f32 %v649_v14, %v1430_v47 }
 0x205   : > { %v1041_v7 = vpop.eup %1040 }
 0x206   : > { %v861_v59 = vsel %vm859_vm4, %v860_v52, %v858_v40  ;;  %vm836_vm4 = vcmp.eq.f32.partialorder %v1426_v42, 1065353216  ;;  %v908_v12 = vsel %vm907_vm11, 2143289344, %v1041_v7  ;;  %v650_v42 = vsub.f32 1.0, %v1485_v8 }
 0x207   : > { %v868_v1 = vsel %vm1719_vm12, %v867_v60, %v861_v59  ;;  %v910_v15 = vsel %vm902_vm1, %v909_v62, %v908_v12  ;;  %vm926_vm1 = vcmp.ne.f32.partialorder %v1493_v11, %v1493_v11  ;;  %vm888_vm12 = vcmp.eq.f32.partialorder %v1458_v57, 1065353216  ;;  %v725_v57 = vld [vmem:[%s1691_s1 + $0x60] sm:$0xff] }
 0x208   : > { %v873_v9 = vsel %vm854_vm15, %v872_v6, %v868_v1  ;;  %v912_v17 = vxor.u32 2147483648, %v910_v15  ;;  %vm906_vm15 = vcmp.eq.f32.partialorder %v1499_v13, 2139095040  ;;  %vm928_vm5 = vmor %vm926_vm1, %vm927_vm3  ;;  %vm1722_vm11 = vcmp.gt.f32.partialorder %v1477_v3, 0.0 }
 0x209   : > { %v877_v58 = vsel %vm1600_vm8, 2143289344, %v873_v9  ;;  %vm911_vm8 = vmand %vm904_vm7, %vm1575_vm2  ;;  %vm1721_vm2 = vcmp.eq.f32.partialorder %v1472_v0, 2139095040  ;;  %v652_v0 = vmul.f32 %v650_v42, %v1479_v4 }
 0x20a   : > { %v879_v43 = vsel %vm878_vm10, 1065353216, %v877_v58  ;;  %v913_v50 = vsel %vm911_vm8, %v912_v17, %v910_v15 }
 0x20b   : > { %v880_v45 = vsel %vm836_vm4, %v1451_v53, %v879_v43  ;;  %v919_v53 = vsel %vm918_vm14, 1065353216, %v917_v16  ;;  %vm930_vm4 = vmor %vm903_vm0, %vm887_vm9 }
 0x20c   : > { %v643_v18 = vsel %vm1720_vm6, %v880_v45, 0.0  ;;  %v920_v8 = vsel %vm1721_vm2, %v919_v53, %v913_v50 }
 0x20d   : > { %v671_v2 = vsub.f32 %v1416_v37, %v643_v18  ;;  %v925_v21 = vsel %vm906_vm15, %v924_v19, %v920_v8  ;;  %v681_v37 = vadd.f32 %v651_v44, %v643_v18 }
 0x20e   : > { %v929_v22 = vsel %vm928_vm5, 2143289344, %v925_v21 }
 0x20f   : > { %v673_v20 = vsub.f32 %v671_v2, %v1430_v47  ;;  %v931_v23 = vsel %vm930_vm4, 1065353216, %v929_v22  ;;  %v683_v47 = vadd.f32 %v681_v37, %v1488_v10 }
 0x210   : > { %v932_v13 = vsel %vm888_vm12, %v1493_v11, %v931_v23 }
 0x211   : > { %675 = vst [vmem:[#allocation4] sm:$0xff] %v673_v20  ;;  %v644_v24 = vsel %vm1722_vm11, %v932_v13, 0.0  ;;  %v685_v3 = vmul.f32 %v725_v57, %v683_v47 }
 0x212   : > { %v672_v26 = vsub.f32 %v1435_v49, %v644_v24  ;;  %v682_v27 = vadd.f32 %v652_v0, %v644_v24 }
 0x214   : > { %v674_v11 = vsub.f32 %v672_v26, %v1479_v4  ;;  %v684_v29 = vadd.f32 %v682_v27, %v1523_v25 }
 0x216   : > { %676 = vst [vmem:[#allocation4 + $0x8] sm:$0xff] %v674_v11  ;;  %v686_v30 = vmul.f32 %v726_v28, %v684_v29 }
 0x218   : > { %v687_v10 = vadd.f32 %v686_v30, %v685_v3 }
 0x21a   : > { %v688_v31 = vrot.slane %v687_v10, 4 }
 0x21c   : > { %v689_v63 = vadd.f32 %v688_v31, %v687_v10 }
 0x21e   : > { %v690_v49 = vrot.slane %v689_v63, 2 }
 0x220   : > { %v691_v32 = vadd.f32 %v690_v49, %v689_v63  ;;  %39 = sbr.rel (!%p37_p0) target bundleno = 5 (0x5), region = 65 }
 0x222   : > { %v692_v33 = vrot.slane %v691_v32, 1 }
 0x224   : > { %v693_v34 = vadd.f32 %v692_v33, %v691_v32 }
 0x226   : > { %695 = vst [vmem:[%s694_s20] sm:$0x1] %v693_v34 }

</bundles_post_ra>
